<compile_context>
chip_gen: v7x
topology: tpu7x:2x2x1
jax: 0.10.0
libtpu: 0.0.40
codegen_flags: <defaults>
</compile_context>

<pallas_src>
import functools

import numpy as np
import jax
import jax.numpy as jnp
from jax import lax
from jax.experimental import pallas as pl
from jax.experimental.pallas import tpu as pltpu


# ----------------------------- Pallas kernel -------------------------------
def _source_kernel(amp, noise_std, rad_ref, uv_ref, noise_ref, w_ref, b_ref,
                   out_ref, tri_ref, phase_acc):
    """Fused SineGen tail + Linear(H->1) + tanh for one (batch, time) block.

    Block shapes (leading batch dim squeezed away by the BlockSpec):
      rad_ref   : (H, Tt)  f32   per-sample phase increments [cycles]
      uv_ref    : (1, Tt)  f32   voiced/unvoiced flag
      noise_ref : (H, Tt)  bf16  unit gaussian noise
      w_ref     : (H,)     f32   Linear weight (SMEM)
      b_ref     : (1,)     f32   Linear bias   (SMEM)
      out_ref   : (1, Tt)  f32
      tri_ref   : (Tt, Tt) f32   VMEM scratch, upper-triangular ones
      phase_acc : (H, 1)   f32   VMEM scratch, running phase carry
    """
    H, Tt = rad_ref.shape
    t = pl.program_id(1)

    @pl.when(t == 0)
    def _():
        # Build the inclusive-prefix-sum matrix once per batch block and reset
        # the phase carry (runs once per core under megacore batch sharding).
        row = lax.broadcasted_iota(jnp.int32, (Tt, Tt), 0)   # source index s
        col = lax.broadcasted_iota(jnp.int32, (Tt, Tt), 1)   # target index t
        tri_ref[...] = (row <= col).astype(jnp.float32)
        phase_acc[...] = jnp.zeros_like(phase_acc)

    rad = rad_ref[...]                                        # (H, Tt)

    # Inclusive cumulative sum along time (lane axis) via the MXU:
    #   ph[h, t] = sum_{s <= t} rad[h, s]
    # Output lane dim = Tt (full MXU width). HIGHEST keeps the phase exact in
    # f32 so rounding does not accumulate across blocks via phase_acc.
    ph = jnp.dot(rad, tri_ref[...],
                 preferred_element_type=jnp.float32,
                 precision=lax.Precision.HIGHEST)             # (H, Tt)
    ph = ph + phase_acc[...]                                  # carry (H, 1)
    phase_acc[...] = ph[:, Tt - 1:Tt]                         # update carry

    sine = jnp.sin(ph * (2.0 * np.pi)) * amp                  # (H, Tt)  EUP
    uv = uv_ref[...]                                          # (1, Tt)
    noise = noise_ref[...].astype(jnp.float32)                # (H, Tt)
    noise_amp = uv * noise_std + (1.0 - uv) * (amp / 3.0)     # (1, Tt)
    sine_waves = sine * uv + noise_amp * noise                # (H, Tt)

    # Linear(H -> 1): weighted sum over the H sublane rows (plain VPU FMAs),
    # producing a lane-dense (1, Tt) output row.
    merged = jnp.zeros((1, Tt), jnp.float32)
    for h in range(H):
        merged = merged + w_ref[h] * sine_waves[h:h + 1, :]
    out_ref[...] = jnp.tanh(merged + b_ref[0])


def pallas_source_module(phase_inc, uv_up, noise, w, b, *, amp, noise_std,
                         tile_t):
    """phase_inc (B,H,T) f32, uv_up (B,1,T) f32, noise (B,H,T) bf16,
    w (H,) f32, b (1,) f32  ->  (B, 1, T) f32."""
    B, H, T = phase_inc.shape
    assert T % tile_t == 0 and tile_t % 128 == 0
    grid = (B, T // tile_t)
    kernel = functools.partial(_source_kernel, float(amp), float(noise_std))
    return pl.pallas_call(
        kernel,
        out_shape=jax.ShapeDtypeStruct((B, 1, T), jnp.float32),
        grid_spec=pltpu.PrefetchScalarGridSpec(
            num_scalar_prefetch=0,
            grid=grid,
            in_specs=[
                pl.BlockSpec((None, H, tile_t), lambda bi, ti: (bi, 0, ti)),
                pl.BlockSpec((None, 1, tile_t), lambda bi, ti: (bi, 0, ti)),
                pl.BlockSpec((None, H, tile_t), lambda bi, ti: (bi, 0, ti)),
                pl.BlockSpec(memory_space=pltpu.MemorySpace.SMEM),   # w (H,)
                pl.BlockSpec(memory_space=pltpu.MemorySpace.SMEM),   # b (1,)
            ],
            out_specs=pl.BlockSpec((None, 1, tile_t), lambda bi, ti: (bi, 0, ti)),
            scratch_shapes=[
                pltpu.VMEM((tile_t, tile_t), jnp.float32),   # tri (built at t==0)
                pltpu.VMEM((H, 1), jnp.float32),             # running phase carry
            ],
        ),
        compiler_params=pltpu.CompilerParams(
            # Batch blocks are independent (shard across v7x's 2 TensorCores);
            # the time axis is serial because the phase carry lives in scratch.
            dimension_semantics=("parallel", "arbitrary"),
            vmem_limit_bytes=32 * 1024 * 1024,
        ),
    )(phase_inc, uv_up, noise, w, b)


# --------------------------- SineGen JAX glue -------------------------------
def _interp_linear_align_corners(x, upp):
    """F.interpolate(mode='linear', align_corners=True, scale_factor=upp)
    along the last axis. x: (B, C, L) -> (B, C, L*upp)."""
    B, C, L = x.shape
    out = L * upp
    if L == 1:
        return jnp.repeat(x, out, axis=2)
    j = jnp.arange(out, dtype=jnp.float32)
    pos = j * (L - 1) / (out - 1)
    lo = jnp.floor(pos).astype(jnp.int32)
    hi = jnp.minimum(lo + 1, L - 1)
    frac = (pos - lo.astype(jnp.float32))[None, None, :]
    return x[:, :, lo] * (1.0 - frac) + x[:, :, hi] * frac


def sine_gen_preprocess(f0, upp, *, fs, harmonic_num, voiced_threshold, key):
    """Frame-rate part of SineGen in channel-first layout. f0: (B, L).
    Returns phase increments (B,H,T) f32, uv (B,1,T) f32, noise (B,H,T) bf16."""
    B, L = f0.shape
    H = harmonic_num + 1
    f0 = f0.astype(jnp.float32)
    mult = jnp.arange(1, H + 1, dtype=jnp.float32)            # 1..harmonic_num+1
    f0_buf = f0[:, None, :] * mult[None, :, None]             # (B, H, L)
    rad_values = (f0_buf / fs) % 1.0

    k_ini, k_noise = jax.random.split(key)
    rand_ini = jax.random.uniform(k_ini, (B, H), dtype=jnp.float32)
    rand_ini = rand_ini.at[:, 0].set(0.0)                     # fundamental: no offset
    rad_values = rad_values.at[:, :, 0].add(rand_ini)

    tmp_over_one = jnp.cumsum(rad_values, axis=2) * upp
    tmp_over_one = _interp_linear_align_corners(tmp_over_one, upp)   # (B, H, T)
    rad_values_up = jnp.repeat(rad_values, upp, axis=2)              # nearest
    tmp_over_one = tmp_over_one % 1.0
    over_idx = (tmp_over_one[:, :, 1:] - tmp_over_one[:, :, :-1]) < 0
    cumsum_shift = jnp.concatenate(
        [jnp.zeros((B, H, 1), jnp.float32), -over_idx.astype(jnp.float32)],
        axis=2)
    phase_inc = rad_values_up + cumsum_shift                         # (B, H, T)

    uv = (f0 > voiced_threshold).astype(jnp.float32)[:, None, :]     # (B, 1, L)
    uv_up = jnp.repeat(uv, upp, axis=2)                              # (B, 1, T)
    noise = jax.random.normal(k_noise, (B, H, L * upp),
                              dtype=jnp.bfloat16)                    # bf16 DMA
    return phase_inc, uv_up, noise


def source_module_hn_nsf(f0, upp, w, b, *, fs, harmonic_num, amp, noise_std,
                         voiced_threshold, key, tile_t):
    phase_inc, uv_up, noise = sine_gen_preprocess(
        f0, upp, fs=fs, harmonic_num=harmonic_num,
        voiced_threshold=voiced_threshold, key=key)
    out_b1t = pallas_source_module(phase_inc, uv_up, noise, w, b,
                                   amp=amp, noise_std=noise_std, tile_t=tile_t)
    sine_merge = jnp.transpose(out_b1t, (0, 2, 1))   # module output (B, T, 1)
    return sine_merge, (phase_inc, uv_up, noise)


# ------------------------------ reference -----------------------------------
def reference_tail(phase_inc, uv_up, noise_bf16, w, b, amp, noise_std):
    ph = jnp.cumsum(phase_inc, axis=2)                          # (B, H, T)
    sine = jnp.sin(ph * 2.0 * np.pi) * amp
    noise = noise_bf16.astype(jnp.float32)
    noise_amp = uv_up * noise_std + (1.0 - uv_up) * amp / 3.0   # (B, 1, T)
    sine_waves = sine * uv_up + noise_amp * noise               # (B, H, T)
    merged = jnp.einsum("bht,h->bt", sine_waves, w) + b[0]      # Linear(H -> 1)
    return jnp.tanh(merged)                                     # (B, T)


# ------------------------------- main ----------------------------------------
if __name__ == "__main__":
    fs = 16000
    harmonic_num = 8                 # H = 9
    amp = 0.1
    noise_std = 0.003
    voiced_threshold = 0.0

    B, L, upp = 2, 8, 64             # T = L * upp = 512
    tile_t = 256                     # multiple of 128; 2 serial time blocks
    H = harmonic_num + 1

    key = jax.random.PRNGKey(0)
    k_f0, k_v, k_w, k_b, k_sg = jax.random.split(key, 5)

    # f0 contour with some unvoiced (zero) frames.
    f0 = jax.random.uniform(k_f0, (B, L), minval=80.0, maxval=400.0)
    voiced = (jax.random.uniform(k_v, (B, L)) > 0.25).astype(jnp.float32)
    f0 = (f0 * voiced).astype(jnp.float32)

    # Deterministic Linear(harmonic_num+1 -> 1) parameters.
    w = (jax.random.normal(k_w, (H,)) / np.sqrt(H)).astype(jnp.float32)
    b = (0.01 * jax.random.normal(k_b, (1,))).astype(jnp.float32)

    sine_merge, (phase_inc, uv_up, noise) = source_module_hn_nsf(
        f0, upp, w, b, fs=fs, harmonic_num=harmonic_num, amp=amp,
        noise_std=noise_std, voiced_threshold=voiced_threshold, key=k_sg,
        tile_t=tile_t)
    sine_merge = jax.block_until_ready(sine_merge)
    assert sine_merge.shape == (B, L * upp, 1)

    ref = reference_tail(phase_inc, uv_up, noise, w, b, amp, noise_std)
    max_diff = float(jnp.max(jnp.abs(sine_merge[..., 0] - ref)))
    assert max_diff < 5e-3, f"mismatch vs reference: {max_diff}"

    print("KERNEL_OK")
</pallas_src>

<mosaic_0001>
module attributes {stable_mosaic.version = 11 : i64} {
  func.func @_source_kernel(%arg0: i32, %arg1: i32, %arg2: memref<1x9x256xf32, #tpu.memory_space<vmem>>, %arg3: memref<1x1x256xf32, #tpu.memory_space<vmem>>, %arg4: memref<1x9x256xbf16, #tpu.memory_space<vmem>>, %arg5: memref<9xf32, #tpu.memory_space<smem>>, %arg6: memref<1xf32, #tpu.memory_space<smem>>, %arg7: memref<1x1x256xf32, #tpu.memory_space<vmem>>, %arg8: memref<256x256xf32, #tpu.memory_space<vmem>>, %arg9: memref<9x1xf32, #tpu.memory_space<vmem>>) attributes {dimension_semantics = [#tpu.dimension_semantics<parallel>, #tpu.dimension_semantics<arbitrary>], iteration_bounds = array<i64: 2, 2>, scalar_prefetch = 0 : i64, scratch_operands = 2 : i64, tpu.core_type = #tpu.core_type<tc>, window_params = [{transform_indices = @transform_0, window_bounds = array<i64: 1, 9, 256>}, {transform_indices = @transform_1, window_bounds = array<i64: 1, 1, 256>}, {transform_indices = @transform_2, window_bounds = array<i64: 1, 9, 256>}, {transform_indices = @transform_3, window_bounds = array<i64: 9>}, {transform_indices = @transform_4, window_bounds = array<i64: 1>}, {transform_indices = @transform_5, window_bounds = array<i64: 1, 1, 256>}]} {
    %c0_i32 = arith.constant 0 : i32
    %0 = arith.cmpi eq, %arg1, %c0_i32 : i32
    %1 = arith.extui %0 : i1 to i32
    %c0_i32_0 = arith.constant 0 : i32
    %2 = arith.cmpi ne, %1, %c0_i32_0 : i32
    scf.if %2 {
      %87 = tpu.iota {dimensions = array<i32: 0>} : vector<256x256xi32>
      %88 = tpu.iota {dimensions = array<i32: 1>} : vector<256x256xi32>
      %89 = arith.cmpi sle, %87, %88 : vector<256x256xi32>
      %90 = arith.extui %89 : vector<256x256xi1> to vector<256x256xi32>
      %91 = arith.sitofp %90 : vector<256x256xi32> to vector<256x256xf32>
      %c0_26 = arith.constant 0 : index
      %c0_27 = arith.constant 0 : index
      %92 = vector.load %arg8[%c0_26, %c0_27] : memref<256x256xf32, #tpu.memory_space<vmem>>, vector<256x256xf32>
      tpu.vector_store %arg8[%c0_26, %c0_27], %91 {strides = array<i32>} : memref<256x256xf32, #tpu.memory_space<vmem>>, vector<256x256xf32>,
      %cst_28 = arith.constant 0.000000e+00 : f32
      %93 = vector.broadcast %cst_28 : f32 to vector<9x1xf32>
      %c0_29 = arith.constant 0 : index
      %c0_30 = arith.constant 0 : index
      %94 = vector.load %arg9[%c0_29, %c0_30] : memref<9x1xf32, #tpu.memory_space<vmem>>, vector<9x1xf32>
      tpu.vector_store %arg9[%c0_29, %c0_30], %93 {strides = array<i32>} : memref<9x1xf32, #tpu.memory_space<vmem>>, vector<9x1xf32>,
    } else {
    }
    %c0 = arith.constant 0 : index
    %c0_1 = arith.constant 0 : index
    %c0_2 = arith.constant 0 : index
    %3 = vector.load %arg2[%c0, %c0_1, %c0_2] : memref<1x9x256xf32, #tpu.memory_space<vmem>>, vector<1x9x256xf32>
    %4 = vector.shape_cast %3 : vector<1x9x256xf32> to vector<9x256xf32>
    %c0_3 = arith.constant 0 : index
    %c0_4 = arith.constant 0 : index
    %5 = vector.load %arg8[%c0_3, %c0_4] : memref<256x256xf32, #tpu.memory_space<vmem>>, vector<256x256xf32>
    %cst = arith.constant dense<0.000000e+00> : vector<9x256xf32>
    %6 = tpu.matmul %4, %5, %cst {dimension_numbers = #tpu.dot_dimension_numbers<[1], [0], [0], [1], [0, 0, 1, 1], [], []>, precision = #tpu.contract_precision<fp32>} : vector<9x256xf32>, vector<256x256xf32>, vector<9x256xf32> -> vector<9x256xf32>
    %c0_5 = arith.constant 0 : index
    %c0_6 = arith.constant 0 : index
    %7 = vector.load %arg9[%c0_5, %c0_6] : memref<9x1xf32, #tpu.memory_space<vmem>>, vector<9x1xf32>
    %8 = vector.broadcast %7 : vector<9x1xf32> to vector<9x256xf32>
    %9 = arith.addf %6, %8 : vector<9x256xf32>
    %10 = vector.extract_strided_slice %9 {offsets = [0, 255], sizes = [9, 1], strides = [1, 1]} : vector<9x256xf32> to vector<9x1xf32>
    %c0_7 = arith.constant 0 : index
    %c0_8 = arith.constant 0 : index
    %11 = vector.load %arg9[%c0_7, %c0_8] : memref<9x1xf32, #tpu.memory_space<vmem>>, vector<9x1xf32>
    tpu.vector_store %arg9[%c0_7, %c0_8], %10 {strides = array<i32>} : memref<9x1xf32, #tpu.memory_space<vmem>>, vector<9x1xf32>,
    %cst_9 = arith.constant 6.28318548 : f32
    %12 = vector.broadcast %cst_9 : f32 to vector<9x256xf32>
    %13 = arith.mulf %9, %12 : vector<9x256xf32>
    %14 = math.sin %13 : vector<9x256xf32>
    %cst_10 = arith.constant 1.000000e-01 : f32
    %15 = vector.broadcast %cst_10 : f32 to vector<9x256xf32>
    %16 = arith.mulf %14, %15 : vector<9x256xf32>
    %c0_11 = arith.constant 0 : index
    %c0_12 = arith.constant 0 : index
    %c0_13 = arith.constant 0 : index
    %17 = vector.load %arg3[%c0_11, %c0_12, %c0_13] : memref<1x1x256xf32, #tpu.memory_space<vmem>>, vector<1x1x256xf32>
    %18 = vector.shape_cast %17 : vector<1x1x256xf32> to vector<1x256xf32>
    %c0_14 = arith.constant 0 : index
    %c0_15 = arith.constant 0 : index
    %c0_16 = arith.constant 0 : index
    %19 = vector.load %arg4[%c0_14, %c0_15, %c0_16] : memref<1x9x256xbf16, #tpu.memory_space<vmem>>, vector<1x9x256xbf16>
    %20 = vector.shape_cast %19 : vector<1x9x256xbf16> to vector<9x256xbf16>
    %21 = arith.extf %20 : vector<9x256xbf16> to vector<9x256xf32>
    %cst_17 = arith.constant 3.000000e-03 : f32
    %22 = vector.broadcast %cst_17 : f32 to vector<1x256xf32>
    %23 = arith.mulf %18, %22 : vector<1x256xf32>
    %cst_18 = arith.constant 1.000000e+00 : f32
    %24 = vector.broadcast %cst_18 : f32 to vector<1x256xf32>
    %25 = arith.subf %24, %18 : vector<1x256xf32>
    %cst_19 = arith.constant 0.0333333351 : f32
    %26 = vector.broadcast %cst_19 : f32 to vector<1x256xf32>
    %27 = arith.mulf %25, %26 : vector<1x256xf32>
    %28 = arith.addf %23, %27 : vector<1x256xf32>
    %29 = vector.broadcast %18 : vector<1x256xf32> to vector<9x256xf32>
    %30 = arith.mulf %16, %29 : vector<9x256xf32>
    %31 = vector.broadcast %28 : vector<1x256xf32> to vector<9x256xf32>
    %32 = arith.mulf %31, %21 : vector<9x256xf32>
    %33 = arith.addf %30, %32 : vector<9x256xf32>
    %cst_20 = arith.constant 0.000000e+00 : f32
    %34 = vector.broadcast %cst_20 : f32 to vector<1x256xf32>
    %c0_21 = arith.constant 0 : index
    %35 = memref.load %arg5[%c0_21] : memref<9xf32, #tpu.memory_space<smem>>
    %36 = vector.extract_strided_slice %33 {offsets = [0, 0], sizes = [1, 256], strides = [1, 1]} : vector<9x256xf32> to vector<1x256xf32>
    %37 = vector.broadcast %35 : f32 to vector<1x256xf32>
    %38 = arith.mulf %37, %36 : vector<1x256xf32>
    %39 = arith.addf %34, %38 : vector<1x256xf32>
    %c1 = arith.constant 1 : index
    %40 = memref.load %arg5[%c1] : memref<9xf32, #tpu.memory_space<smem>>
    %41 = vector.extract_strided_slice %33 {offsets = [1, 0], sizes = [1, 256], strides = [1, 1]} : vector<9x256xf32> to vector<1x256xf32>
    %42 = vector.broadcast %40 : f32 to vector<1x256xf32>
    %43 = arith.mulf %42, %41 : vector<1x256xf32>
    %44 = arith.addf %39, %43 : vector<1x256xf32>
    %c2 = arith.constant 2 : index
    %45 = memref.load %arg5[%c2] : memref<9xf32, #tpu.memory_space<smem>>
    %46 = vector.extract_strided_slice %33 {offsets = [2, 0], sizes = [1, 256], strides = [1, 1]} : vector<9x256xf32> to vector<1x256xf32>
    %47 = vector.broadcast %45 : f32 to vector<1x256xf32>
    %48 = arith.mulf %47, %46 : vector<1x256xf32>
    %49 = arith.addf %44, %48 : vector<1x256xf32>
    %c3 = arith.constant 3 : index
    %50 = memref.load %arg5[%c3] : memref<9xf32, #tpu.memory_space<smem>>
    %51 = vector.extract_strided_slice %33 {offsets = [3, 0], sizes = [1, 256], strides = [1, 1]} : vector<9x256xf32> to vector<1x256xf32>
    %52 = vector.broadcast %50 : f32 to vector<1x256xf32>
    %53 = arith.mulf %52, %51 : vector<1x256xf32>
    %54 = arith.addf %49, %53 : vector<1x256xf32>
    %c4 = arith.constant 4 : index
    %55 = memref.load %arg5[%c4] : memref<9xf32, #tpu.memory_space<smem>>
    %56 = vector.extract_strided_slice %33 {offsets = [4, 0], sizes = [1, 256], strides = [1, 1]} : vector<9x256xf32> to vector<1x256xf32>
    %57 = vector.broadcast %55 : f32 to vector<1x256xf32>
    %58 = arith.mulf %57, %56 : vector<1x256xf32>
    %59 = arith.addf %54, %58 : vector<1x256xf32>
    %c5 = arith.constant 5 : index
    %60 = memref.load %arg5[%c5] : memref<9xf32, #tpu.memory_space<smem>>
    %61 = vector.extract_strided_slice %33 {offsets = [5, 0], sizes = [1, 256], strides = [1, 1]} : vector<9x256xf32> to vector<1x256xf32>
    %62 = vector.broadcast %60 : f32 to vector<1x256xf32>
    %63 = arith.mulf %62, %61 : vector<1x256xf32>
    %64 = arith.addf %59, %63 : vector<1x256xf32>
    %c6 = arith.constant 6 : index
    %65 = memref.load %arg5[%c6] : memref<9xf32, #tpu.memory_space<smem>>
    %66 = vector.extract_strided_slice %33 {offsets = [6, 0], sizes = [1, 256], strides = [1, 1]} : vector<9x256xf32> to vector<1x256xf32>
    %67 = vector.broadcast %65 : f32 to vector<1x256xf32>
    %68 = arith.mulf %67, %66 : vector<1x256xf32>
    %69 = arith.addf %64, %68 : vector<1x256xf32>
    %c7 = arith.constant 7 : index
    %70 = memref.load %arg5[%c7] : memref<9xf32, #tpu.memory_space<smem>>
    %71 = vector.extract_strided_slice %33 {offsets = [7, 0], sizes = [1, 256], strides = [1, 1]} : vector<9x256xf32> to vector<1x256xf32>
    %72 = vector.broadcast %70 : f32 to vector<1x256xf32>
    %73 = arith.mulf %72, %71 : vector<1x256xf32>
    %74 = arith.addf %69, %73 : vector<1x256xf32>
    %c8 = arith.constant 8 : index
    %75 = memref.load %arg5[%c8] : memref<9xf32, #tpu.memory_space<smem>>
    %76 = vector.extract_strided_slice %33 {offsets = [8, 0], sizes = [1, 256], strides = [1, 1]} : vector<9x256xf32> to vector<1x256xf32>
    %77 = vector.broadcast %75 : f32 to vector<1x256xf32>
    %78 = arith.mulf %77, %76 : vector<1x256xf32>
    %79 = arith.addf %74, %78 : vector<1x256xf32>
    %c0_22 = arith.constant 0 : index
    %80 = memref.load %arg6[%c0_22] : memref<1xf32, #tpu.memory_space<smem>>
    %81 = vector.broadcast %80 : f32 to vector<1x256xf32>
    %82 = arith.addf %79, %81 : vector<1x256xf32>
    %83 = math.tanh %82 : vector<1x256xf32>
    %c0_23 = arith.constant 0 : index
    %c0_24 = arith.constant 0 : index
    %c0_25 = arith.constant 0 : index
    %84 = vector.load %arg7[%c0_23, %c0_24, %c0_25] : memref<1x1x256xf32, #tpu.memory_space<vmem>>, vector<1x1x256xf32>
    %85 = vector.shape_cast %84 : vector<1x1x256xf32> to vector<1x256xf32>
    %86 = vector.shape_cast %83 : vector<1x256xf32> to vector<1x1x256xf32>
    tpu.vector_store %arg7[%c0_23, %c0_24, %c0_25], %86 {strides = array<i32>} : memref<1x1x256xf32, #tpu.memory_space<vmem>>, vector<1x1x256xf32>,
    return
  }
  func.func @transform_0(%arg0: i32, %arg1: i32) -> (i32, i32, i32) {
    %c0_i32 = arith.constant 0 : i32
    %c0_i32_0 = arith.constant 0 : i32
    return %arg0, %c0_i32, %arg1 : i32, i32, i32
  }
  func.func @transform_1(%arg0: i32, %arg1: i32) -> (i32, i32, i32) {
    %c0_i32 = arith.constant 0 : i32
    %c0_i32_0 = arith.constant 0 : i32
    return %arg0, %c0_i32, %arg1 : i32, i32, i32
  }
  func.func @transform_2(%arg0: i32, %arg1: i32) -> (i32, i32, i32) {
    %c0_i32 = arith.constant 0 : i32
    %c0_i32_0 = arith.constant 0 : i32
    return %arg0, %c0_i32, %arg1 : i32, i32, i32
  }
  func.func @transform_3(%arg0: i32, %arg1: i32) -> i32 {
    %c0_i32 = arith.constant 0 : i32
    %c0_i32_0 = arith.constant 0 : i32
    return %c0_i32 : i32
  }
  func.func @transform_4(%arg0: i32, %arg1: i32) -> i32 {
    %c0_i32 = arith.constant 0 : i32
    %c0_i32_0 = arith.constant 0 : i32
    return %c0_i32 : i32
  }
  func.func @transform_5(%arg0: i32, %arg1: i32) -> (i32, i32, i32) {
    %c0_i32 = arith.constant 0 : i32
    %c0_i32_0 = arith.constant 0 : i32
    return %arg0, %c0_i32, %arg1 : i32, i32, i32
  }
}

</mosaic_0001>

<bundles_post_ra>
// kernel: tpu_custom_call.1
= control target key start
LH: loop header
LB: loop body
LE: loop exit
PB: predicated region body
PF: predicated region fallthrough
CT: control target
= control target key end

     0   :  { %s5151_s0 = inlined_call_operand.vmem [shape: f32[2,9,512], index: 0, kind: input, shape index: {}]   ;;  %s5152_s1 = inlined_call_operand.vmem [shape: f32[2,1,512], index: 1, kind: input, shape index: {}]   ;;  %s5153_s2 = inlined_call_operand.vmem [shape: bf16[2,9,512], index: 2, kind: input, shape index: {}]   ;;  %s5154_s3 = inlined_call_operand.vmem [shape: f32[9], index: 3, kind: input, shape index: {}]   ;;  %s5155_s4 = inlined_call_operand.<no memory space> [shape: f32[1], index: 4, kind: input, shape index: {}]   ;;  %s5156_s5 = inlined_call_operand.hbm [shape: f32[2,1,512], index: 5, kind: output, shape index: {}]  }
   0x1   :  { %5298 = sst [smem:[#allocation104_spill]] %s5154_s3 }
   0x2   :  { %10 = sst [smem:[#allocation4]] %s5155_s4 }
   0x3   :  { %11 = vsyncpa [#allocation9], 0 }
   0x4   :  { %12 = vsyncpa [#allocation8], 0 }
   0x5   :  { %14 = vsyncpa [#allocation8 + $0x1], 0  ;;  %s3642_s20 = smov 0   ;;  %s3644_s21 = smov 0  }
   0x6   :  { %s3646_s22 = smov 0   ;;  %s3648_s23 = smov 0  }
   0x7   :  { %s3650_s24 = smov 0   ;;  %s3652_s25 = smov 0  }
   0x8   :  { %s3654_s26 = smov 0   ;;  %s3656_s27 = smov 0  }
   0x9 LB: > { %s2860_s4 = sadd.s32 4294967295, %s3594_s27   ;;  %s2861_s28 = sadd.s32 4294967294, %s3594_s27   ;;  %s3594_s27 = sphi %s3656_s27, %s20_s27   ;;  %s3590_s26 = sphi %s3654_s26, %s5580_s26   ;;  %s3586_s25 = sphi %s3652_s25, %s5579_s25   ;;  %s3582_s24 = sphi %s3650_s24, %s5578_s24   ;;  %s3578_s23 = sphi %s3648_s23, %s5577_s23   ;;  %s3574_s22 = sphi %s3646_s22, %s5576_s22   ;;  %s3570_s21 = sphi %s3644_s21, %s5575_s21   ;;  %s3566_s20 = sphi %s3642_s20, %s5574_s20  }
   0xa   : > { %s29_s29 = sadd.s32 1, %s3586_s25  ;;  %s32_s30 = sadd.s32 1, %s3590_s26 }
   0xb   : > { %p30_p0 = scmp.ge.s32.totalorder %s29_s29, 2  ;;  %s41_s6 = sadd.s32 1, %s3574_s22 }
   0xc   : > { %p48_p1 = scmp.ne.s32.totalorder %s3574_s22, %s3570_s21  ;;  %p49_p2 = scmp.eq.s32.totalorder %s3594_s27, 0 }
   0xd   : > { %s5582_s29 = smov (%p30_p0, %s29_s29), 0  ;;  %s5584_s30 = smov (!%p30_p0, %s32_s30), %s3590_s26 }
   0xe   : > { %s37_s7 = ssub.s32 %s3586_s25, %s5582_s29  ;;  %p3695_p3 = por %p49_p2, %p48_p1 }
   0xf   : > { %p34_p4 = scmp.ge.s32.totalorder %s5584_s30, 2  ;;  %p178_p5 = scmp.eq.s32.totalorder %s2860_s4, 3 }
  0x10   : > { %p183_p6 = scmp.ne.s32.totalorder %s3570_s21, %s3566_s20  ;;  %p184_p7 = scmp.eq.s32.totalorder %s2861_s28, 3 }
  0x11   : > { %s5586_s30 = smov (%p34_p4, %s5584_s30), 0  ;;  %p3703_p8 = por %p178_p5, %p48_p1 }
  0x12   : > { %p3707_p9 = por %p184_p7, %p183_p6  ;;  %s36_s11 = ssub.s32 %s3590_s26, %s5586_s30 }
  0x13   : > { %s5300_s9 = scalar_select %p3703_p8, 1, 0 }
  0x14   : > { %s5301_s10 = scalar_select %p3707_p9, 1, 0 }
  0x15   : > { %p2862_p10 = scmp.ge.s32.totalorder %s3594_s27, 1  ;;  %s38_s12 = sor.u32 %s37_s7, %s36_s11 }
  0x16   : > { %p191_p11 = scmp.lt.s32.totalorder %s3594_s27, 5  ;;  %p39_p12 = scmp.eq.s32.totalorder %s38_s12, 0 }
  0x17   : > { %p3719_p0 = scmp.eq.s32.totalorder %s2860_s4, 0  ;;  %s5304_s3 = sld [smem:[#allocation104_spill]] }
  0x18   : > { %p3715_p13 = pnand %p2862_p10, %p191_p11 }
  0x19   : > { %s3724_s15 = scalar_select %p39_p12, %s3574_s22, %s41_s6  }
  0x1a   : > { %p3373_p1 = pneg %p3715_p13 }
  0x1c   : > { %p3374_p2 = pnand %p3719_p0, %p3373_p1 }
  0x1d   : > { %s204_s18 = sshll.u32 %s5304_s3, 4  ;;  %s205_s18 = int_to_ptr.vmem [resolvable:$true] %s204_s18 }
  0x1e   : > { %s3481_s19 = scalar_lea.vmem %s205_s18, 16  ;;  %p3483_p5 = pneg %p3374_p2 }
  0x1f   : > { %p3482_p4 = scmp.ne.s32.totalorder %s205_s18, %s3481_s19  ;;  %p3489_p10 = scmp.lt.s32.totalorder %s205_s18, %s205_s18 }
  0x20   : > { %p3490_p11 = scmp.lt.s32.totalorder %s3481_s19, %s3481_s19 }
  0x21   : > { %p3484_p6 = pnand %p3483_p5, %p3482_p4 }
  0x22   : > { %p3491_p9 = por %p3490_p11, %p3489_p10 }
  0x23   : > { %p3485_p7 = pneg %p3484_p6 }
  0x25   : > { %p3492_p8 = pnand %p3491_p9, %p3485_p7 }
  0x27   : > { %3495 = shalt.err (!%p3492_p8)
}
  0x28   : > { %s3596_s4 = smov [#allocation7]   ;;  %p2864_p12 = scmp.ge.s32.totalorder %s3594_s27, 4 }
  0x29   : > { %3376 = dma.vmem_to_smem (!%p3374_p2), %s205_s18, 16, %s3596_s4, [#allocation9]  }
  0x2a   : > { %214 = sbr.rel (%p2864_p12) target bundleno = 66 (0x42), region = 24 }
  0x31   : > { %217 = sbr.rel (!%p3695_p3) target bundleno = 58 (0x3a), region = 28  ;;  %s219_s28 = sand.u32 (%p3695_p3), 1, %s3574_s22  }
  0x32   : > { %s2866_s6 = sshll.u32 (%p3695_p3), %s3586_s25, 1  ;;  %s2865_s7 = sshll.u32 (%p3695_p3), %s219_s28, 5 }
  0x33   : > { %s2867_s11 = sshll.u32 (%p3695_p3), %s3590_s26, 3  ;;  %s221_s18 = scalar_lea.vmem (%p3695_p3), [#allocation5], %s2865_s7 }
  0x34   : > { %s224_s12 = sadd.s32 (%p3695_p3), %s2867_s11, %s2866_s6 }
  0x35   : > { %s2868_s16 = sshll.u32 (%p3695_p3), %s224_s12, 3 }
  0x36   : > { %s226_s3 = scalar_lea.vmem (%p3695_p3), %s5151_s0, %s2868_s16 }
  0x37   : > { %v239_v0 = vld [vmem:[%s226_s3] sm:$0xff] (%p3695_p3)  ;;  %v241_v1 = vld [vmem:[%s226_s3 + $0x8] sm:$0xff] (%p3695_p3) }
  0x38   : > { %v243_v2 = vld [vmem:[%s226_s3 + $0x20] sm:$0xff]  ;;  %240 = vst [vmem:[%s221_s18] sm:$0xff] %v239_v0  ;;  %242 = vst [vmem:[%s221_s18 + $0x8] sm:$0xff] %v241_v1  ;;  %v245_v3 = vld [vmem:[%s226_s3 + $0x28] sm:$0xff] }
  0x39   : > { %244 = vst [vmem:[%s221_s18 + $0x10] sm:$0xff] %v243_v2  ;;  %246 = vst [vmem:[%s221_s18 + $0x18] sm:$0xff] %v245_v3 }
  0x3a PF: > { %264 = sbr.rel (!%p3695_p3) target bundleno = 66 (0x42), region = 55  ;;  %s266_s4 = sand.u32 (%p3695_p3), 1, %s3574_s22  }
  0x3b   : > { %s2870_s28 = sshll.u32 (%p3695_p3), %s3586_s25, 1  ;;  %s2869_s6 = sshll.u32 (%p3695_p3), %s266_s4, 4 }
  0x3c   : > { %s2871_s11 = sshll.u32 (%p3695_p3), %s3590_s26, 3  ;;  %s268_s3 = scalar_lea.vmem (%p3695_p3), [#allocation6], %s2869_s6 }
  0x3d   : > { %s271_s12 = sadd.s32 (%p3695_p3), %s2871_s11, %s2870_s28 }
  0x3e   : > { %s2872_s16 = sshll.u32 (%p3695_p3), %s271_s12, 2 }
  0x3f   : > { %s273_s19 = scalar_lea.vmem (%p3695_p3), %s5153_s2, %s2872_s16 }
  0x40   : > { %v303_v4 = vld [vmem:[%s273_s19] sm:$0xff] (%p3695_p3)  ;;  %v305_v5 = vld [vmem:[%s273_s19 + $0x10] sm:$0xff] (%p3695_p3) }
  0x41   : > { %304 = vst [vmem:[%s268_s3] sm:$0xff] %v303_v4  ;;  %306 = vst [vmem:[%s268_s3 + $0x8] sm:$0xff] %v305_v5 }
  0x42 PF: > { %315 = sbr.rel (%p3715_p13) target bundleno = 716 (0x2cc), region = 93 }
  0x49   : > { %s3753_s8 = sand.u32 1, %s3570_s21  }
  0x4a   : > { %s2874_s18 = sshll.u32 %s3753_s8, 5  ;;  %s2875_s4 = sshll.u32 %s3753_s8, 4 }
  0x4b   : > { %s3757_s28 = scalar_lea.vmem [#allocation5], %s2874_s18  ;;  %s3759_s11 = scalar_lea.vmem [#allocation6], %s2875_s4 }
  0x4c   : > { %3557 = dma.done.wait (%p3719_p0), [#allocation9], 16  }
  0x4d   : > { %3559 = vsyncadd (%p3719_p0), [#allocation9], 4294967280 }
  0x4e   : > { %335 = sfence }
  0x4f   : > { %s2877_s13 = sshll.u32 %s3753_s8, 1  ;;  %s3767_s6 = sshll.u32 %s3578_s23, 1 }
  0x50   : > { %p371_p3 = scmp.lt.s32.totalorder %s3582_s24, 1  ;;  %p373_p8 = scmp.lt.s32.totalorder %s3767_s6, 3 }
  0x51   : > { %s3779_s18 = scalar_lea.vmem [#allocation10], %s2877_s13  ;;  %p2880_p9 = scmp.ne.s32.totalorder %s3578_s23, 0 }
  0x52   : > { %s372_s12 = scalar_select %p371_p3, %s3582_s24, 1 }
  0x53   : > { %s374_s16 = scalar_select %p373_p8, %s3767_s6, 3 }
  0x54   : > { %s2879_s17 = sshll.u32 %s372_s12, 2  ;;  %384 = sbr.rel (%p2880_p9) target bundleno = 118 (0x76), region = 109  ;;  %v385_v6 = vlaneseq (!%p2880_p9)  ;;  %vm677_vm0 = vcmask (!%p2880_p9), 7168   ;;  %v3597_v7 = vmov (!%p2880_p9), 0.0   ;;  %v3598_v8 = vmov (!%p2880_p9), 1.0  }
  0x55   : > { %s3773_s7 = sadd.s32 %s2879_s17, %s374_s16  ;;  %645 = vst [vmem:[#allocation2 + $0x100] sm:$0xff] (!%p2880_p9), %v3597_v7  ;;  %647 = vst [vmem:[#allocation2 + $0x110] sm:$0xff] (!%p2880_p9), %v3597_v7  ;;  %vm679_vm1 = vcmask (!%p2880_p9), 0  }
  0x56   : > { %s377_s3 = scalar_lea.vmem %s5152_s1, %s3773_s7  ;;  %649 = vst [vmem:[#allocation2 + $0x120] sm:$0xff] (!%p2880_p9), %v3597_v7  ;;  %651 = vst [vmem:[#allocation2 + $0x130] sm:$0xff] (!%p2880_p9), %v3597_v7  ;;  %v3800_v9 = vshrl.u32 (!%p2880_p9), %v385_v6, 7  ;;  %v3802_v10 = vand.u32 (!%p2880_p9), 127, %v385_v6 }
  0x57   : > { %653 = vst [vmem:[#allocation2 + $0x140] sm:$0xff] (!%p2880_p9), %v3597_v7  ;;  %655 = vst [vmem:[#allocation2 + $0x150] sm:$0xff] (!%p2880_p9), %v3597_v7 }
  0x58   : > { %657 = vst [vmem:[#allocation2 + $0x160] sm:$0xff] (!%p2880_p9), %v3597_v7  ;;  %659 = vst [vmem:[#allocation2 + $0x170] sm:$0xff] (!%p2880_p9), %v3597_v7  ;;  %vm421_vm2 = vcmp.le.s32.totalorder (!%p2880_p9), %v3800_v9, %v3802_v10  ;;  %v387_v11 = vadd.s32 (!%p2880_p9), 8, %v3800_v9  ;;  %v388_v12 = vadd.s32 (!%p2880_p9), 16, %v3800_v9  ;;  %v389_v13 = vadd.s32 (!%p2880_p9), 24, %v3800_v9 }
  0x59   : > { %661 = vst [vmem:[#allocation2 + $0x180] sm:$0xff] (!%p2880_p9), %v3597_v7  ;;  %663 = vst [vmem:[#allocation2 + $0x190] sm:$0xff] (!%p2880_p9), %v3597_v7  ;;  %v2881_v14 = vsel (!%p2880_p9), %vm421_vm2, 1.0, %v3597_v7  ;;  %v390_v15 = vadd.s32 (!%p2880_p9), 32, %v3800_v9  ;;  %v391_v16 = vadd.s32 (!%p2880_p9), 40, %v3800_v9  ;;  %v392_v17 = vadd.s32 (!%p2880_p9), 48, %v3800_v9 }
  0x5a   : > { %665 = vst [vmem:[#allocation2 + $0x1a0] sm:$0xff] (!%p2880_p9), %v3597_v7  ;;  %667 = vst [vmem:[#allocation2 + $0x1b0] sm:$0xff] (!%p2880_p9), %v3597_v7  ;;  %vm423_vm3 = vcmp.le.s32.totalorder (!%p2880_p9), %v387_v11, %v3802_v10  ;;  %vm425_vm4 = vcmp.le.s32.totalorder (!%p2880_p9), %v388_v12, %v3802_v10  ;;  %vm427_vm5 = vcmp.le.s32.totalorder (!%p2880_p9), %v389_v13, %v3802_v10  ;;  %v393_v18 = vadd.s32 (!%p2880_p9), 56, %v3800_v9 }
  0x5b   : > { %669 = vst [vmem:[#allocation2 + $0x1c0] sm:$0xff] %v3597_v7  ;;  %671 = vst [vmem:[#allocation2 + $0x1d0] sm:$0xff] %v3597_v7  ;;  %v2882_v19 = vsel %vm423_vm3, 1.0, %v3597_v7  ;;  %v2883_v20 = vsel %vm425_vm4, 1.0, %v3597_v7  ;;  %v2884_v21 = vsel %vm427_vm5, 1.0, %v3597_v7  ;;  %vm429_vm6 = vcmp.le.s32.totalorder %v390_v15, %v3802_v10 }
  0x5c   : > { %673 = vst [vmem:[#allocation2 + $0x1e0] sm:$0xff] %v3597_v7  ;;  %675 = vst [vmem:[#allocation2 + $0x1f0] sm:$0xff] %v3597_v7  ;;  %v2885_v22 = vsel %vm429_vm6, 1.0, %v3597_v7  ;;  %vm431_vm7 = vcmp.le.s32.totalorder %v391_v16, %v3802_v10  ;;  %vm433_vm8 = vcmp.le.s32.totalorder %v392_v17, %v3802_v10  ;;  %vm435_vm9 = vcmp.le.s32.totalorder %v393_v18, %v3802_v10 }
  0x5d   : > { %614 = vst [vmem:[#allocation2 + $0x8] sm:$0xff] %v3598_v8  ;;  %616 = vst [vmem:[#allocation2 + $0x18] sm:$0xff] %v3598_v8  ;;  %v2886_v23 = vsel %vm431_vm7, 1.0, %v3597_v7  ;;  %v2887_v24 = vsel %vm433_vm8, 1.0, %v3597_v7  ;;  %v2888_v25 = vsel %vm435_vm9, 1.0, %v3597_v7  ;;  %v394_v26 = vadd.s32 64, %v3800_v9 }
  0x5e   : > { %618 = vst [vmem:[#allocation2 + $0x28] sm:$0xff] %v3598_v8  ;;  %620 = vst [vmem:[#allocation2 + $0x38] sm:$0xff] %v3598_v8  ;;  %v395_v27 = vadd.s32 72, %v3800_v9  ;;  %v396_v28 = vadd.s32 80, %v3800_v9  ;;  %v397_v29 = vadd.s32 88, %v3800_v9  ;;  %v398_v30 = vadd.s32 96, %v3800_v9 }
  0x5f   : > { %622 = vst [vmem:[#allocation2 + $0x48] sm:$0xff] %v3598_v8  ;;  %624 = vst [vmem:[#allocation2 + $0x58] sm:$0xff] %v3598_v8  ;;  %vm437_vm10 = vcmp.le.s32.totalorder %v394_v26, %v3802_v10  ;;  %v399_v31 = vadd.s32 104, %v3800_v9  ;;  %v400_v32 = vadd.s32 112, %v3800_v9  ;;  %v401_v33 = vadd.s32 120, %v3800_v9 }
  0x60   : > { %626 = vst [vmem:[#allocation2 + $0x68] sm:$0xff] %v3598_v8  ;;  %628 = vst [vmem:[#allocation2 + $0x78] sm:$0xff] %v3598_v8  ;;  %v2889_v34 = vsel %vm437_vm10, 1.0, %v3597_v7  ;;  %vm439_vm11 = vcmp.le.s32.totalorder %v395_v27, %v3802_v10  ;;  %vm441_vm12 = vcmp.le.s32.totalorder %v396_v28, %v3802_v10  ;;  %vm443_vm13 = vcmp.le.s32.totalorder %v397_v29, %v3802_v10 }
  0x61   : > { %630 = vst [vmem:[#allocation2 + $0x88] sm:$0xff] %v3598_v8  ;;  %632 = vst [vmem:[#allocation2 + $0x98] sm:$0xff] %v3598_v8  ;;  %v2890_v35 = vsel %vm439_vm11, 1.0, %v3597_v7  ;;  %v2891_v36 = vsel %vm441_vm12, 1.0, %v3597_v7  ;;  %v2892_v37 = vsel %vm443_vm13, 1.0, %v3597_v7  ;;  %vm445_vm14 = vcmp.le.s32.totalorder %v398_v30, %v3802_v10 }
  0x62   : > { %634 = vst [vmem:[#allocation2 + $0xa8] sm:$0xff] %v3598_v8  ;;  %636 = vst [vmem:[#allocation2 + $0xb8] sm:$0xff] %v3598_v8  ;;  %v2893_v38 = vsel %vm445_vm14, 1.0, %v3597_v7  ;;  %vm447_vm15 = vcmp.le.s32.totalorder %v399_v31, %v3802_v10  ;;  %v402_v42 = vadd.s32 128, %v3800_v9  ;;  %v420_v43 = vadd.s32 128, %v3802_v10 }
  0x63   : > { %638 = vst [vmem:[#allocation2 + $0xc8] sm:$0xff] %v3598_v8  ;;  %640 = vst [vmem:[#allocation2 + $0xd8] sm:$0xff] %v3598_v8  ;;  %v2894_v39 = vsel %vm447_vm15, 1.0, %v3597_v7  ;;  %v403_v44 = vadd.s32 136, %v3800_v9  ;;  %v404_v45 = vadd.s32 144, %v3800_v9  ;;  %v405_v46 = vadd.s32 152, %v3800_v9 }
  0x64   : > { %642 = vst [vmem:[#allocation2 + $0xe8] sm:$0xff] %v3598_v8  ;;  %644 = vst [vmem:[#allocation2 + $0xf8] sm:$0xff] %v3598_v8  ;;  %v406_v47 = vadd.s32 160, %v3800_v9  ;;  %v407_v48 = vadd.s32 168, %v3800_v9  ;;  %v408_v49 = vadd.s32 176, %v3800_v9  ;;  %v409_v50 = vadd.s32 184, %v3800_v9 }
  0x65   : > { %678 = vst.msk [vmem:[#allocation3] sm:$0xff] %vm677_vm0, %v3597_v7  ;;  %613 = vst [vmem:[#allocation2] sm:$0xff] %v2881_v14  ;;  %vm449_vm0 = vcmp.le.s32.totalorder %v400_v32, %v3802_v10  ;;  %vm454_vm2 = vcmp.le.s32.totalorder %v402_v42, %v420_v43  ;;  %vm456_vm3 = vcmp.le.s32.totalorder %v403_v44, %v420_v43  ;;  %v410_v59 = vadd.s32 192, %v3800_v9 }
  0x66   : > { %680 = vst.msk [vmem:[#allocation3 + $0x8] sm:$0x1] %vm679_vm1, %v3597_v7  ;;  %615 = vst [vmem:[#allocation2 + $0x10] sm:$0xff] %v2882_v19  ;;  %vm451_vm1 = vcmp.le.s32.totalorder %v401_v33, %v3802_v10  ;;  %v2895_v40 = vsel %vm449_vm0, 1.0, %v3597_v7  ;;  %vm458_vm4 = vcmp.le.s32.totalorder %v404_v45, %v420_v43  ;;  %vm460_vm5 = vcmp.le.s32.totalorder %v405_v46, %v420_v43 }
  0x67   : > { %617 = vst [vmem:[#allocation2 + $0x20] sm:$0xff] %v2883_v20  ;;  %619 = vst [vmem:[#allocation2 + $0x30] sm:$0xff] %v2884_v21  ;;  %v2896_v41 = vsel %vm451_vm1, 1.0, %v3597_v7  ;;  %v2897_v51 = vsel %vm454_vm2, 1.0, %v3597_v7  ;;  %v2898_v52 = vsel %vm456_vm3, 1.0, %v3597_v7  ;;  %v2899_v53 = vsel %vm458_vm4, 1.0, %v3597_v7 }
  0x68   : > { %621 = vst [vmem:[#allocation2 + $0x40] sm:$0xff] %v2885_v22  ;;  %623 = vst [vmem:[#allocation2 + $0x50] sm:$0xff] %v2886_v23  ;;  %v2900_v54 = vsel %vm460_vm5, 1.0, %v3597_v7  ;;  %vm462_vm6 = vcmp.le.s32.totalorder %v406_v47, %v420_v43  ;;  %vm464_vm7 = vcmp.le.s32.totalorder %v407_v48, %v420_v43  ;;  %vm466_vm8 = vcmp.le.s32.totalorder %v408_v49, %v420_v43 }
  0x69   : > { %625 = vst [vmem:[#allocation2 + $0x60] sm:$0xff] %v2887_v24  ;;  %627 = vst [vmem:[#allocation2 + $0x70] sm:$0xff] %v2888_v25  ;;  %vm468_vm9 = vcmp.le.s32.totalorder %v409_v50, %v420_v43  ;;  %v2901_v55 = vsel %vm462_vm6, 1.0, %v3597_v7  ;;  %v2902_v56 = vsel %vm464_vm7, 1.0, %v3597_v7  ;;  %v2903_v57 = vsel %vm466_vm8, 1.0, %v3597_v7 }
  0x6a   : > { %629 = vst [vmem:[#allocation2 + $0x80] sm:$0xff] %v2889_v34  ;;  %631 = vst [vmem:[#allocation2 + $0x90] sm:$0xff] %v2890_v35  ;;  %v2904_v58 = vsel %vm468_vm9, 1.0, %v3597_v7  ;;  %v411_v60 = vadd.s32 200, %v3800_v9  ;;  %v412_v61 = vadd.s32 208, %v3800_v9  ;;  %v413_v62 = vadd.s32 216, %v3800_v9 }
  0x6b   : > { %633 = vst [vmem:[#allocation2 + $0xa0] sm:$0xff] %v2891_v36  ;;  %635 = vst [vmem:[#allocation2 + $0xb0] sm:$0xff] %v2892_v37  ;;  %v414_v63 = vadd.s32 224, %v3800_v9  ;;  %v415_v0 = vadd.s32 232, %v3800_v9  ;;  %v416_v1 = vadd.s32 240, %v3800_v9  ;;  %v417_v2 = vadd.s32 248, %v3800_v9 }
  0x6c   : > { %637 = vst [vmem:[#allocation2 + $0xc0] sm:$0xff] %v2893_v38  ;;  %639 = vst [vmem:[#allocation2 + $0xd0] sm:$0xff] %v2894_v39  ;;  %vm470_vm10 = vcmp.le.s32.totalorder %v410_v59, %v420_v43  ;;  %vm472_vm11 = vcmp.le.s32.totalorder %v411_v60, %v420_v43  ;;  %vm474_vm12 = vcmp.le.s32.totalorder %v412_v61, %v420_v43 }
  0x6d   : > { %641 = vst [vmem:[#allocation2 + $0xe0] sm:$0xff] %v2895_v40  ;;  %643 = vst [vmem:[#allocation2 + $0xf0] sm:$0xff] %v2896_v41  ;;  %vm476_vm13 = vcmp.le.s32.totalorder %v413_v62, %v420_v43  ;;  %v2905_v3 = vsel %vm470_vm10, 1.0, %v3597_v7  ;;  %v2906_v4 = vsel %vm472_vm11, 1.0, %v3597_v7  ;;  %v2907_v5 = vsel %vm474_vm12, 1.0, %v3597_v7 }
  0x6e   : > { %646 = vst [vmem:[#allocation2 + $0x108] sm:$0xff] %v2897_v51  ;;  %648 = vst [vmem:[#allocation2 + $0x118] sm:$0xff] %v2898_v52  ;;  %v2908_v6 = vsel %vm476_vm13, 1.0, %v3597_v7  ;;  %vm478_vm14 = vcmp.le.s32.totalorder %v414_v63, %v420_v43  ;;  %vm480_vm15 = vcmp.le.s32.totalorder %v415_v0, %v420_v43  ;;  %vm482_vm0 = vcmp.le.s32.totalorder %v416_v1, %v420_v43 }
  0x6f   : > { %650 = vst [vmem:[#allocation2 + $0x128] sm:$0xff] %v2899_v53  ;;  %652 = vst [vmem:[#allocation2 + $0x138] sm:$0xff] %v2900_v54  ;;  %vm484_vm1 = vcmp.le.s32.totalorder %v417_v2, %v420_v43  ;;  %v2909_v8 = vsel %vm478_vm14, 1.0, %v3597_v7  ;;  %v2910_v9 = vsel %vm480_vm15, 1.0, %v3597_v7  ;;  %v2911_v10 = vsel %vm482_vm0, 1.0, %v3597_v7 }
  0x70   : > { %654 = vst [vmem:[#allocation2 + $0x148] sm:$0xff] %v2901_v55  ;;  %656 = vst [vmem:[#allocation2 + $0x158] sm:$0xff] %v2902_v56  ;;  %v2912_v11 = vsel %vm484_vm1, 1.0, %v3597_v7 }
  0x71   : > { %658 = vst [vmem:[#allocation2 + $0x168] sm:$0xff] %v2903_v57  ;;  %660 = vst [vmem:[#allocation2 + $0x178] sm:$0xff] %v2904_v58 }
  0x72   : > { %662 = vst [vmem:[#allocation2 + $0x188] sm:$0xff] %v2905_v3  ;;  %664 = vst [vmem:[#allocation2 + $0x198] sm:$0xff] %v2906_v4 }
  0x73   : > { %666 = vst [vmem:[#allocation2 + $0x1a8] sm:$0xff] %v2907_v5  ;;  %668 = vst [vmem:[#allocation2 + $0x1b8] sm:$0xff] %v2908_v6 }
  0x74   : > { %670 = vst [vmem:[#allocation2 + $0x1c8] sm:$0xff] %v2909_v8  ;;  %672 = vst [vmem:[#allocation2 + $0x1d8] sm:$0xff] %v2910_v9 }
  0x75   : > { %674 = vst [vmem:[#allocation2 + $0x1e8] sm:$0xff] %v2911_v10  ;;  %676 = vst [vmem:[#allocation2 + $0x1f8] sm:$0xff] %v2912_v11 }
  0x76 PF: > { %v686_v12 = vld [vmem:[#allocation2 + $0x8] sm:$0xff]  ;;  %v688_v13 = vld [vmem:[#allocation2 + $0x18] sm:$0xff]  ;;  %v685_v14 = vld [vmem:[#allocation2] sm:$0xff]  ;;  %s3600_s23 = smov 1   ;;  %s4988_s13 = sld [smem:[#allocation7 + $0x1]] }
  0x77   : > { %v761_v15 = vand.u32 4294901760, %v686_v12  ;;  %v765_v16 = vand.u32 4294901760, %v688_v13  ;;  %v687_v17 = vld [vmem:[#allocation2 + $0x10] sm:$0xff]  ;;  %v763_v18 = vand.u32 4294901760, %v685_v14  ;;  %v690_v19 = vld [vmem:[#allocation2 + $0x28] sm:$0xff]  ;;  %v692_v20 = vld [vmem:[#allocation2 + $0x38] sm:$0xff] }
  0x78   : > { %v767_v21 = vand.u32 4294901760, %v687_v17  ;;  %v769_v22 = vand.u32 4294901760, %v690_v19  ;;  %v773_v23 = vand.u32 4294901760, %v692_v20  ;;  %v689_v24 = vld [vmem:[#allocation2 + $0x20] sm:$0xff]  ;;  %v691_v25 = vld [vmem:[#allocation2 + $0x30] sm:$0xff]  ;;  %v694_v7 = vld [vmem:[#allocation2 + $0x48] sm:$0xff] }
  0x79   : > { %v3886_v26 = vpack.c.bf16 %v765_v16, %v761_v15  ;;  %v696_v27 = vld [vmem:[#allocation2 + $0x58] sm:$0xff]  ;;  %v693_v28 = vld [vmem:[#allocation2 + $0x40] sm:$0xff]  ;;  %v695_v29 = vld [vmem:[#allocation2 + $0x50] sm:$0xff]  ;;  %v771_v34 = vand.u32 4294901760, %v689_v24  ;;  %v775_v35 = vand.u32 4294901760, %v691_v25  ;;  %v777_v36 = vand.u32 4294901760, %v694_v7 }
  0x7a   : > { %v3888_v30 = vpack.c.bf16 %v767_v21, %v763_v18  ;;  %v3890_v31 = vpack.c.bf16 %v773_v23, %v769_v22  ;;  %v698_v32 = vld [vmem:[#allocation2 + $0x68] sm:$0xff]  ;;  %v700_v33 = vld [vmem:[#allocation2 + $0x78] sm:$0xff]  ;;  %v3894_v37 = vsub.f32 %v686_v12, %v761_v15  ;;  %v781_v38 = vand.u32 4294901760, %v696_v27  ;;  %v697_v45 = vld [vmem:[#allocation2 + $0x60] sm:$0xff]  ;;  %s5009_s12 = sld [smem:[#allocation7]]  ;;  %s5011_s16 = sld [smem:[#allocation7 + $0x2]] }
  0x7b   : > { %5305 = vst [vmem:[#allocation13_spill] sm:$0xff] %v3886_v26  ;;  %2944 = vmatprep.subr.bf16.mxu1 %v3886_v26  ;;  %3136 = vmatprep.subr.bf16.mxu0 %v3886_v26  ;;  %v779_v39 = vand.u32 4294901760, %v693_v28  ;;  %v783_v40 = vand.u32 4294901760, %v695_v29  ;;  %v3898_v41 = vsub.f32 %v688_v13, %v765_v16  ;;  %v3902_v42 = vpack.c.bf16 %v775_v35, %v771_v34  ;;  %v699_v46 = vld [vmem:[#allocation2 + $0x70] sm:$0xff]  ;;  %v702_v47 = vld [vmem:[#allocation2 + $0x88] sm:$0xff]  ;;  %v704_v52 = vld [vmem:[#allocation2 + $0x98] sm:$0xff] }
  0x7c   : > { %5306 = vst [vmem:[#allocation14_spill] sm:$0xff] %v3888_v30  ;;  %5307 = vst [vmem:[#allocation15_spill] sm:$0xff] %v3890_v31  ;;  %2946 = vmatpush1.bf16.msra.mxu1 %v3888_v30  ;;  %3138 = vmatpush1.bf16.msra.mxu0 %v3888_v30  ;;  %v785_v43 = vand.u32 4294901760, %v698_v32  ;;  %v789_v44 = vand.u32 4294901760, %v700_v33  ;;  %v3904_v48 = vsub.f32 %v685_v14, %v763_v18  ;;  %v701_v53 = vld [vmem:[#allocation2 + $0x80] sm:$0xff]  ;;  %v703_v54 = vld [vmem:[#allocation2 + $0x90] sm:$0xff] }
  0x7d   : > { %5308 = vst [vmem:[#allocation16_spill] sm:$0xff] %v3894_v37  ;;  %5309 = vst [vmem:[#allocation17_spill] sm:$0xff] %v3898_v41  ;;  %2948 = vmatprep.subr.bf16.mxu1 %v3890_v31  ;;  %3140 = vmatprep.subr.bf16.mxu0 %v3890_v31  ;;  %v3906_v49 = vsub.f32 %v687_v17, %v767_v21  ;;  %v3908_v50 = vsub.f32 %v690_v19, %v769_v22  ;;  %v787_v60 = vand.u32 4294901760, %v697_v45  ;;  %v706_v63 = vld [vmem:[#allocation2 + $0xa8] sm:$0xff]  ;;  %v708_v4 = vld [vmem:[#allocation2 + $0xb8] sm:$0xff]  ;;  %s5021_s17 = sld [smem:[#allocation7 + $0x3]] }
  0x7e   : > { %5310 = vst [vmem:[#allocation18_spill] sm:$0xff] %v3902_v42  ;;  %5311 = vst [vmem:[#allocation19_spill] sm:$0xff] %v3904_v48  ;;  %v3910_v51 = vpack.c.bf16 %v781_v38, %v777_v36  ;;  %v3912_v55 = vsub.f32 %v692_v20, %v773_v23  ;;  %v3914_v56 = vsub.f32 %v689_v24, %v771_v34  ;;  %v791_v61 = vand.u32 4294901760, %v699_v46  ;;  %v705_v10 = vld [vmem:[#allocation2 + $0xa0] sm:$0xff]  ;;  %v707_v15 = vld [vmem:[#allocation2 + $0xb0] sm:$0xff]  ;;  %s5032_s7 = sld [smem:[#allocation7 + $0x4]] }
  0x7f   : > { %5312 = vst [vmem:[#allocation20_spill] sm:$0xff] %v3906_v49  ;;  %5313 = vst [vmem:[#allocation21_spill] sm:$0xff] %v3908_v50  ;;  %v3916_v57 = vsub.f32 %v691_v25, %v775_v35  ;;  %v3918_v58 = vsub.f32 %v694_v7, %v777_v36  ;;  %v3922_v59 = vpack.c.bf16 %v783_v40, %v779_v39  ;;  %v793_v62 = vand.u32 4294901760, %v702_v47  ;;  %v710_v16 = vld [vmem:[#allocation2 + $0xc8] sm:$0xff]  ;;  %v712_v17 = vld [vmem:[#allocation2 + $0xd8] sm:$0xff]  ;;  %s5038_s14 = sld [smem:[#allocation7 + $0x5]] }
  0x80   : > { %5314 = vst [vmem:[#allocation22_spill] sm:$0xff] %v3910_v51  ;;  %5315 = vst [vmem:[#allocation23_spill] sm:$0xff] %v3912_v55  ;;  %2950 = vmatpush1.bf16.msra.mxu1 %v3902_v42  ;;  %3142 = vmatpush1.bf16.msra.mxu0 %v3902_v42  ;;  %v3926_v0 = vpack.c.bf16 %v789_v44, %v785_v43  ;;  %v797_v1 = vand.u32 4294901760, %v704_v52  ;;  %v795_v2 = vand.u32 4294901760, %v701_v53  ;;  %v799_v3 = vand.u32 4294901760, %v703_v54  ;;  %v709_v22 = vld [vmem:[#allocation2 + $0xc0] sm:$0xff] }
  0x81   : > { %5316 = vst [vmem:[#allocation24_spill] sm:$0xff] %v3922_v59  ;;  %2952 = vmatprep.subr.bf16.mxu1 %v3910_v51  ;;  %3144 = vmatprep.subr.bf16.mxu0 %v3910_v51  ;;  %v3928_v5 = vsub.f32 %v696_v27, %v781_v38  ;;  %v3930_v6 = vsub.f32 %v693_v28, %v779_v39  ;;  %v801_v14 = vand.u32 4294901760, %v706_v63  ;;  %v805_v21 = vand.u32 4294901760, %v708_v4  ;;  %v711_v23 = vld [vmem:[#allocation2 + $0xd0] sm:$0xff]  ;;  %v714_v27 = vld [vmem:[#allocation2 + $0xe8] sm:$0xff]  ;;  %v716_v28 = vld [vmem:[#allocation2 + $0xf8] sm:$0xff] }
  0x82   : > { %5317 = vst [vmem:[#allocation25_spill] sm:$0xff] %v3926_v0  ;;  %v3932_v8 = vsub.f32 %v695_v29, %v783_v40  ;;  %v3934_v9 = vsub.f32 %v698_v32, %v785_v43  ;;  %v3936_v11 = vsub.f32 %v700_v33, %v789_v44  ;;  %v3938_v12 = vpack.c.bf16 %v791_v61, %v787_v60  ;;  %v713_v35 = vld [vmem:[#allocation2 + $0xe0] sm:$0xff]  ;;  %v715_v36 = vld [vmem:[#allocation2 + $0xf0] sm:$0xff]  ;;  %s5045_s19 = sld [smem:[#allocation7 + $0x6]]  ;;  %s2939_s4 = sshll.u32 %s3582_s24, 2 }
  0x83   : > { %5318 = vst [vmem:[#allocation26_spill] sm:$0xff] %v3928_v5  ;;  %v3940_v13 = vsub.f32 %v697_v45, %v787_v60  ;;  %v3944_v18 = vsub.f32 %v699_v46, %v791_v61  ;;  %v3946_v19 = vpack.c.bf16 %v797_v1, %v793_v62  ;;  %v3948_v20 = vsub.f32 %v702_v47, %v793_v62  ;;  %v718_v47 = vld [vmem:[#allocation2 + $0x108] sm:$0xff]  ;;  %v717_v62 = vld [vmem:[#allocation2 + $0x100] sm:$0xff]  ;;  %v727_v30 = vld [vmem:[#allocation2 + $0x150] sm:$0xff]  ;;  %s2714_s24 = scalar_lea.sflag [#allocation8], %s3753_s8  ;;  %p5572_p0 = scmp.ne.s32.totalorder %s5300_s9, 0 }
  0x84   : > { %5319 = vst [vmem:[#allocation27_spill] sm:$0xff] %v3932_v8  ;;  %5320 = vst [vmem:[#allocation28_spill] sm:$0xff] %v3934_v9  ;;  %2954 = vmatpush1.bf16.msra.mxu1 %v3922_v59  ;;  %3146 = vmatpush1.bf16.msra.mxu0 %v3922_v59  ;;  %v3952_v24 = vsub.f32 %v704_v52, %v797_v1  ;;  %v3954_v25 = vpack.c.bf16 %v799_v3, %v795_v2  ;;  %v803_v29 = vand.u32 4294901760, %v705_v10  ;;  %v720_v52 = vld [vmem:[#allocation2 + $0x118] sm:$0xff]  ;;  %v725_v31 = vld [vmem:[#allocation2 + $0x140] sm:$0xff] }
  0x85   : > { %5321 = vst [vmem:[#allocation29_spill] sm:$0xff] %v3936_v11  ;;  %5322 = vst [vmem:[#allocation30_spill] sm:$0xff] %v3938_v12  ;;  %2956 = vmatprep.subr.bf16.mxu1 %v3926_v0  ;;  %3148 = vmatprep.subr.bf16.mxu0 %v3926_v0  ;;  %v3956_v7 = vsub.f32 %v701_v53, %v795_v2  ;;  %v807_v32 = vand.u32 4294901760, %v707_v15  ;;  %v809_v33 = vand.u32 4294901760, %v710_v16  ;;  %v813_v34 = vand.u32 4294901760, %v712_v17  ;;  %v724_v0 = vld [vmem:[#allocation2 + $0x138] sm:$0xff] }
  0x86   : > { %5323 = vst [vmem:[#allocation31_spill] sm:$0xff] %v3940_v13  ;;  %5324 = vst [vmem:[#allocation32_spill] sm:$0xff] %v3944_v18  ;;  %v3958_v38 = vsub.f32 %v703_v54, %v799_v3  ;;  %v3960_v39 = vsub.f32 %v706_v63, %v801_v14  ;;  %v811_v40 = vand.u32 4294901760, %v709_v22  ;;  %v815_v43 = vand.u32 4294901760, %v711_v23 }
  0x87   : > { %5325 = vst [vmem:[#allocation33_spill] sm:$0xff] %v3946_v19  ;;  %5326 = vst [vmem:[#allocation34_spill] sm:$0xff] %v3948_v20  ;;  %v3964_v44 = vpack.c.bf16 %v805_v21, %v801_v14  ;;  %v3966_v45 = vsub.f32 %v708_v4, %v805_v21  ;;  %v3968_v46 = vsub.f32 %v705_v10, %v803_v29  ;;  %v817_v53 = vand.u32 4294901760, %v714_v27  ;;  %v719_v4 = vld [vmem:[#allocation2 + $0x110] sm:$0xff] }
  0x88   : > { %5327 = vst [vmem:[#allocation35_spill] sm:$0xff] %v3952_v24  ;;  %5328 = vst [vmem:[#allocation36_spill] sm:$0xff] %v3954_v25  ;;  %2958 = vmatpush1.bf16.msra.mxu1 %v3938_v12  ;;  %3150 = vmatpush1.bf16.msra.mxu0 %v3938_v12  ;;  %v821_v54 = vand.u32 4294901760, %v716_v28  ;;  %v819_v60 = vand.u32 4294901760, %v713_v35  ;;  %v823_v61 = vand.u32 4294901760, %v715_v36  ;;  %v3972_v63 = vpack.c.bf16 %v807_v32, %v803_v29  ;;  %v722_v12 = vld [vmem:[#allocation2 + $0x128] sm:$0xff] }
  0x89   : > { %5329 = vst [vmem:[#allocation37_spill] sm:$0xff] %v3956_v7  ;;  %5330 = vst [vmem:[#allocation38_spill] sm:$0xff] %v3958_v38  ;;  %2960 = vmatprep.subr.bf16.mxu1 %v3946_v19  ;;  %3152 = vmatprep.subr.bf16.mxu0 %v3946_v19  ;;  %v3974_v1 = vsub.f32 %v707_v15, %v807_v32  ;;  %v3976_v2 = vpack.c.bf16 %v813_v34, %v809_v33  ;;  %v825_v21 = vand.u32 4294901760, %v718_v47 }
  0x8a   : > { %5331 = vst [vmem:[#allocation39_spill] sm:$0xff] %v3960_v39  ;;  %5332 = vst [vmem:[#allocation40_spill] sm:$0xff] %v3964_v44  ;;  %v3978_v3 = vsub.f32 %v710_v16, %v809_v33  ;;  %v3980_v10 = vsub.f32 %v712_v17, %v813_v34  ;;  %v3982_v14 = vpack.c.bf16 %v815_v43, %v811_v40  ;;  %v829_v19 = vand.u32 4294901760, %v720_v52  ;;  %v721_v33 = vld [vmem:[#allocation2 + $0x120] sm:$0xff]  ;;  %v723_v17 = vld [vmem:[#allocation2 + $0x130] sm:$0xff] }
  0x8b   : > { %5333 = vst [vmem:[#allocation41_spill] sm:$0xff] %v3966_v45  ;;  %5334 = vst [vmem:[#allocation42_spill] sm:$0xff] %v3968_v46  ;;  %v3986_v29 = vsub.f32 %v709_v22, %v811_v40  ;;  %v3988_v15 = vsub.f32 %v711_v23, %v815_v43  ;;  %v3990_v32 = vsub.f32 %v714_v27, %v817_v53  ;;  %v827_v16 = vand.u32 4294901760, %v717_v62  ;;  %v726_v22 = vld [vmem:[#allocation2 + $0x148] sm:$0xff]  ;;  %v728_v40 = vld [vmem:[#allocation2 + $0x158] sm:$0xff] }
  0x8c   : > { %5335 = vst [vmem:[#allocation43_spill] sm:$0xff] %v3972_v63  ;;  %5336 = vst [vmem:[#allocation44_spill] sm:$0xff] %v3974_v1  ;;  %2962 = vmatpush1.bf16.msra.mxu1 %v3954_v25  ;;  %3154 = vmatpush1.bf16.msra.mxu0 %v3954_v25  ;;  %v3994_v34 = vpack.c.bf16 %v821_v54, %v817_v53  ;;  %v3996_v59 = vsub.f32 %v716_v28, %v821_v54  ;;  %v831_v25 = vand.u32 4294901760, %v719_v4  ;;  %v730_v54 = vld [vmem:[#allocation2 + $0x168] sm:$0xff] }
  0x8d   : > { %5337 = vst [vmem:[#allocation45_spill] sm:$0xff] %v3976_v2  ;;  %5338 = vst [vmem:[#allocation46_spill] sm:$0xff] %v3978_v3  ;;  %2964 = vmatprep.subr.bf16.mxu1 %v3964_v44  ;;  %3156 = vmatprep.subr.bf16.mxu0 %v3964_v44  ;;  %v3998_v51 = vpack.c.bf16 %v823_v61, %v819_v60  ;;  %v4000_v23 = vsub.f32 %v713_v35, %v819_v60  ;;  %v833_v43 = vand.u32 4294901760, %v722_v12 }
  0x8e   : > { %5339 = vst [vmem:[#allocation47_spill] sm:$0xff] %v3980_v10  ;;  %5340 = vst [vmem:[#allocation48_spill] sm:$0xff] %v3982_v14  ;;  %v4002_v27 = vsub.f32 %v715_v36, %v823_v61  ;;  %v837_v42 = vand.u32 4294901760, %v724_v0  ;;  %v4004_v26 = vpack.c.bf16 %v829_v19, %v825_v21  ;;  %v4006_v44 = vsub.f32 %v718_v47, %v825_v21 }
  0x8f   : > { %5341 = vst [vmem:[#allocation49_spill] sm:$0xff] %v3986_v29  ;;  %5342 = vst [vmem:[#allocation50_spill] sm:$0xff] %v3988_v15  ;;  %v835_v53 = vand.u32 4294901760, %v721_v33  ;;  %v839_v28 = vand.u32 4294901760, %v723_v17  ;;  %v4010_v35 = vsub.f32 %v720_v52, %v829_v19  ;;  %v4012_v36 = vsub.f32 %v717_v62, %v827_v16 }
  0x90   : > { %5343 = vst [vmem:[#allocation51_spill] sm:$0xff] %v3990_v32  ;;  %5344 = vst [vmem:[#allocation52_spill] sm:$0xff] %v3994_v34  ;;  %2966 = vmatpush1.bf16.msra.mxu1 %v3972_v63  ;;  %3158 = vmatpush1.bf16.msra.mxu0 %v3972_v63  ;;  %v841_v60 = vand.u32 4294901760, %v726_v22  ;;  %v845_v61 = vand.u32 4294901760, %v728_v40  ;;  %v4016_v47 = vpack.c.bf16 %v831_v25, %v827_v16  ;;  %v731_v32 = vld [vmem:[#allocation2 + $0x170] sm:$0xff]  ;;  %v849_v52 = vand.u32 4294901760, %v730_v54 }
  0x91   : > { %5345 = vst [vmem:[#allocation53_spill] sm:$0xff] %v3996_v59  ;;  %5346 = vst [vmem:[#allocation54_spill] sm:$0xff] %v3998_v51  ;;  %v732_v59 = vld [vmem:[#allocation2 + $0x178] sm:$0xff]  ;;  %2968 = vmatprep.subr.bf16.mxu1 %v3976_v2  ;;  %3160 = vmatprep.subr.bf16.mxu0 %v3976_v2  ;;  %v4018_v21 = vsub.f32 %v719_v4, %v831_v25  ;;  %v4020_v15 = vpack.c.bf16 %v837_v42, %v833_v43  ;;  %v734_v63 = vld [vmem:[#allocation2 + $0x188] sm:$0xff] }
  0x92   : > { %5347 = vst [vmem:[#allocation55_spill] sm:$0xff] %v4000_v23  ;;  %5348 = vst [vmem:[#allocation56_spill] sm:$0xff] %v4002_v27  ;;  %v847_v27 = vand.u32 4294901760, %v727_v30  ;;  %v729_v23 = vld [vmem:[#allocation2 + $0x160] sm:$0xff]  ;;  %v4022_v19 = vsub.f32 %v722_v12, %v833_v43  ;;  %v853_v62 = vand.u32 4294901760, %v732_v59  ;;  %v4026_v29 = vpack.c.bf16 %v839_v28, %v835_v53 }
  0x93   : > { %5349 = vst [vmem:[#allocation57_spill] sm:$0xff] %v4004_v26  ;;  %5350 = vst [vmem:[#allocation58_spill] sm:$0xff] %v4006_v44  ;;  %v843_v44 = vand.u32 4294901760, %v725_v31  ;;  %v4028_v16 = vsub.f32 %v721_v33, %v835_v53  ;;  %v4030_v25 = vsub.f32 %v723_v17, %v839_v28  ;;  %v733_v4 = vld [vmem:[#allocation2 + $0x180] sm:$0xff]  ;;  %v4034_v2 = vpack.c.bf16 %v845_v61, %v841_v60 }
  0x94   : > { %5351 = vst [vmem:[#allocation59_spill] sm:$0xff] %v4010_v35  ;;  %5352 = vst [vmem:[#allocation60_spill] sm:$0xff] %v4012_v36  ;;  %v736_v36 = vld [vmem:[#allocation2 + $0x198] sm:$0xff]  ;;  %v4024_v35 = vsub.f32 %v724_v0, %v837_v42  ;;  %2970 = vmatpush1.bf16.msra.mxu1 %v3982_v14  ;;  %3162 = vmatpush1.bf16.msra.mxu0 %v3982_v14  ;;  %v4036_v12 = vsub.f32 %v726_v22, %v841_v60  ;;  %v851_v43 = vand.u32 4294901760, %v729_v23  ;;  %v738_v42 = vld [vmem:[#allocation2 + $0x1a8] sm:$0xff] }
  0x95   : > { %5353 = vst [vmem:[#allocation61_spill] sm:$0xff] %v4016_v47  ;;  %5354 = vst [vmem:[#allocation62_spill] sm:$0xff] %v4018_v21  ;;  %v735_v21 = vld [vmem:[#allocation2 + $0x190] sm:$0xff]  ;;  %v740_v0 = vld [vmem:[#allocation2 + $0x1b8] sm:$0xff]  ;;  %2972 = vmatprep.subr.bf16.mxu1 %v3994_v34  ;;  %3164 = vmatprep.subr.bf16.mxu0 %v3994_v34  ;;  %v4040_v33 = vsub.f32 %v728_v40, %v845_v61  ;;  %v4042_v17 = vpack.c.bf16 %v847_v27, %v843_v44  ;;  %v857_v53 = vand.u32 4294901760, %v734_v63 }
  0x96   : > { %5355 = vst [vmem:[#allocation63_spill] sm:$0xff] %v4020_v15  ;;  %5356 = vst [vmem:[#allocation64_spill] sm:$0xff] %v4022_v19  ;;  %v855_v19 = vand.u32 4294901760, %v731_v32  ;;  %v861_v28 = vand.u32 4294901760, %v736_v36  ;;  %v4044_v14 = vsub.f32 %v725_v31, %v843_v44  ;;  %v4048_v22 = vpack.c.bf16 %v853_v62, %v849_v52  ;;  %v742_v40 = vld [vmem:[#allocation2 + $0x1c8] sm:$0xff]  ;;  %v744_v61 = vld [vmem:[#allocation2 + $0x1d8] sm:$0xff] }
  0x97   : > { %5357 = vst [vmem:[#allocation65_spill] sm:$0xff] %v4024_v35  ;;  %5358 = vst [vmem:[#allocation66_spill] sm:$0xff] %v4026_v29  ;;  %v4050_v60 = vsub.f32 %v730_v54, %v849_v52  ;;  %v859_v35 = vand.u32 4294901760, %v733_v4  ;;  %v863_v10 = vand.u32 4294901760, %v735_v21  ;;  %v865_v3 = vand.u32 4294901760, %v738_v42 }
  0x98   : > { %5359 = vst [vmem:[#allocation67_spill] sm:$0xff] %v4028_v16  ;;  %5360 = vst [vmem:[#allocation68_spill] sm:$0xff] %v4030_v25  ;;  %v4046_v25 = vsub.f32 %v727_v30, %v847_v27  ;;  %v739_v16 = vld [vmem:[#allocation2 + $0x1b0] sm:$0xff]  ;;  %v869_v34 = vand.u32 4294901760, %v740_v0  ;;  %2974 = vmatpush1.bf16.msra.mxu1 %v3998_v51  ;;  %3166 = vmatpush1.bf16.msra.mxu0 %v3998_v51  ;;  %v4054_v31 = vsub.f32 %v732_v59, %v853_v62 }
  0x99   : > { %5361 = vst [vmem:[#allocation69_spill] sm:$0xff] %v4034_v2  ;;  %5362 = vst [vmem:[#allocation70_spill] sm:$0xff] %v4036_v12  ;;  %v737_v12 = vld [vmem:[#allocation2 + $0x1a0] sm:$0xff]  ;;  %v4056_v30 = vpack.c.bf16 %v855_v19, %v851_v43  ;;  %v4058_v44 = vsub.f32 %v729_v23, %v851_v43  ;;  %2976 = vmatprep.subr.bf16.mxu1 %v4004_v26  ;;  %3168 = vmatprep.subr.bf16.mxu0 %v4004_v26  ;;  %v873_v23 = vand.u32 4294901760, %v742_v40 }
  0x9a   : > { %5363 = vst [vmem:[#allocation71_spill] sm:$0xff] %v4040_v33  ;;  %5364 = vst [vmem:[#allocation72_spill] sm:$0xff] %v4042_v17  ;;  %v4062_v27 = vsub.f32 %v731_v32, %v855_v19  ;;  %v4064_v54 = vpack.c.bf16 %v861_v28, %v857_v53  ;;  %v867_v52 = vand.u32 4294901760, %v737_v12  ;;  %v4066_v51 = vsub.f32 %v734_v63, %v857_v53  ;;  %v746_v19 = vld [vmem:[#allocation2 + $0x1e8] sm:$0xff] }
  0x9b   : > { %5365 = vst [vmem:[#allocation73_spill] sm:$0xff] %v4044_v14  ;;  %5366 = vst [vmem:[#allocation74_spill] sm:$0xff] %v4046_v25  ;;  %v741_v25 = vld [vmem:[#allocation2 + $0x1c0] sm:$0xff]  ;;  %v743_v14 = vld [vmem:[#allocation2 + $0x1d0] sm:$0xff]  ;;  %v4068_v59 = vsub.f32 %v736_v36, %v861_v28  ;;  %v877_v62 = vand.u32 4294901760, %v744_v61  ;;  %v4070_v43 = vpack.c.bf16 %v863_v10, %v859_v35  ;;  %v4074_v26 = vsub.f32 %v735_v21, %v863_v10 }
  0x9c   : > { %5367 = vst [vmem:[#allocation75_spill] sm:$0xff] %v4048_v22  ;;  %5368 = vst [vmem:[#allocation76_spill] sm:$0xff] %v4050_v60  ;;  %v871_v60 = vand.u32 4294901760, %v739_v16  ;;  %v4076_v32 = vpack.c.bf16 %v869_v34, %v865_v3  ;;  %2978 = vmatpush1.bf16.msra.mxu1 %v4016_v47  ;;  %3170 = vmatpush1.bf16.msra.mxu0 %v4016_v47  ;;  %v4081_v63 = vsub.f32 %v738_v42, %v865_v3 }
  0x9d   : > { %5369 = vst [vmem:[#allocation77_spill] sm:$0xff] %v4054_v31  ;;  %5370 = vst [vmem:[#allocation78_spill] sm:$0xff] %v4056_v30  ;;  %v4083_v36 = vsub.f32 %v740_v0, %v869_v34  ;;  %v875_v53 = vand.u32 4294901760, %v741_v25  ;;  %v879_v28 = vand.u32 4294901760, %v743_v14  ;;  %2980 = vmatprep.subr.bf16.mxu1 %v4020_v15  ;;  %3172 = vmatprep.subr.bf16.mxu0 %v4020_v15  ;;  %v881_v34 = vand.u32 4294901760, %v746_v19 }
  0x9e   : > { %5371 = vst [vmem:[#allocation79_spill] sm:$0xff] %v4058_v44  ;;  %5372 = vst [vmem:[#allocation80_spill] sm:$0xff] %v4062_v27  ;;  %v4072_v44 = vsub.f32 %v733_v4, %v859_v35  ;;  %v682_v27 = vld [vmem:[%s3757_s28 + $0x8] sm:$0xff]  ;;  %v4088_v10 = vpack.c.bf16 %v871_v60, %v867_v52  ;;  %v4090_v35 = vsub.f32 %v737_v12, %v867_v52  ;;  %v924_v47 = vand.u32 4294901760, %v3894_v37 }
  0x9f   : > { %5373 = vst [vmem:[#allocation81_spill] sm:$0xff] %v4064_v54  ;;  %5374 = vst [vmem:[#allocation82_spill] sm:$0xff] %v4066_v51  ;;  %v4092_v21 = vsub.f32 %v739_v16, %v871_v60  ;;  %v748_v4 = vld [vmem:[#allocation2 + $0x1f8] sm:$0xff]  ;;  %v4096_v3 = vsub.f32 %v742_v40, %v873_v23  ;;  %v4098_v42 = vand.u32 4294901760, %v682_v27  ;;  %v4100_v0 = vsub.f32 %v744_v61, %v877_v62  ;;  %v745_v60 = vld [vmem:[#allocation2 + $0x1e0] sm:$0xff] }
  0xa0   : > { %5375 = vst [vmem:[#allocation83_spill] sm:$0xff] %v4068_v59  ;;  %5376 = vst [vmem:[#allocation84_spill] sm:$0xff] %v4070_v43  ;;  %v681_v59 = vld [vmem:[%s3757_s28] sm:$0xff]  ;;  %v936_v15 = vand.u32 4294901760, %v3898_v41  ;;  %2982 = vmatpush1.bf16.msra.mxu1 %v4026_v29  ;;  %3174 = vmatpush1.bf16.msra.mxu0 %v4026_v29  ;;  %v4108_v16 = vpack.c.bf16 %v879_v28, %v875_v53  ;;  %v885_v12 = vand.u32 4294901760, %v748_v4  ;;  %v930_v61 = vand.u32 4294901760, %v3904_v48 }
  0xa1   : > { %5377 = vst [vmem:[#allocation85_spill] sm:$0xff] %v4072_v44  ;;  %5378 = vst [vmem:[#allocation86_spill] sm:$0xff] %v4074_v26  ;;  %v4094_v26 = vpack.c.bf16 %v877_v62, %v873_v23  ;;  %v747_v40 = vld [vmem:[#allocation2 + $0x1f0] sm:$0xff]  ;;  %v4111_v52 = vsub.f32 %v682_v27, %v4098_v42  ;;  %2984 = vmatprep.subr.bf16.mxu1 %v4034_v2  ;;  %3176 = vmatprep.subr.bf16.mxu0 %v4034_v2  ;;  %v942_v29 = vand.u32 4294901760, %v3906_v49 }
  0xa2   : > { %5379 = vst [vmem:[#allocation87_spill] sm:$0xff] %v4076_v32  ;;  %5380 = vst [vmem:[#allocation88_spill] sm:$0xff] %v4081_v63  ;;  %v4116_v23 = vsub.f32 %v741_v25, %v875_v53  ;;  %v4118_v62 = vsub.f32 %v743_v14, %v879_v28  ;;  %v937_v27 = vsub.f32 %v3898_v41, %v936_v15  ;;  %v887_v63 = vand.u32 4294901760, %v747_v40 }
  0xa3   : > { %5381 = vst [vmem:[#allocation89_spill] sm:$0xff] %v4083_v36  ;;  %5382 = vst [vmem:[#allocation90_spill] sm:$0xff] %v4088_v10  ;;  %v4104_v36 = vand.u32 4294901760, %v681_v59  ;;  %v931_v25 = vsub.f32 %v3904_v48, %v930_v61  ;;  %v948_v14 = vand.u32 4294901760, %v3908_v50  ;;  %v943_v2 = vsub.f32 %v3906_v49, %v942_v29 }
  0xa4   : > { %5383 = vst [vmem:[#allocation91_spill] sm:$0xff] %v4090_v35  ;;  %5384 = vst [vmem:[#allocation92_spill] sm:$0xff] %v4092_v21  ;;  %v925_v21 = vsub.f32 %v3894_v37, %v924_v47  ;;  %v883_v35 = vand.u32 4294901760, %v745_v60  ;;  %2986 = vmatpush1.bf16.msra.mxu1 %v4042_v17  ;;  %3178 = vmatpush1.bf16.msra.mxu0 %v4042_v17  ;;  %v960_v48 = vand.u32 4294901760, %v3912_v55  ;;  %v954_v17 = vand.u32 4294901760, %v3914_v56 }
  0xa5   : > { %5385 = vst [vmem:[#allocation93_spill] sm:$0xff] %v4094_v26  ;;  %5386 = vst [vmem:[#allocation94_spill] sm:$0xff] %v4096_v3  ;;  %v891_v3 = vand.u32 4294901760, %v4111_v52  ;;  %2988 = vmatprep.subr.bf16.mxu1 %v4048_v22  ;;  %3180 = vmatprep.subr.bf16.mxu0 %v4048_v22  ;;  %v938_v37 = vand.u32 4294901760, %v937_v27  ;;  %v966_v28 = vand.u32 4294901760, %v3916_v57  ;;  %v4149_v49 = vsub.f32 %v747_v40, %v887_v63 }
  0xa6   : > { %5387 = vst [vmem:[#allocation95_spill] sm:$0xff] %v4098_v42  ;;  %5388 = vst [vmem:[#allocation96_spill] sm:$0xff] %v4100_v0  ;;  %v4120_v0 = vsub.f32 %v746_v19, %v881_v34  ;;  %v4127_v42 = vsub.f32 %v681_v59, %v4104_v36  ;;  %v4133_v19 = vpack.c.bf16 %v885_v12, %v881_v34  ;;  %v926_v41 = vand.u32 4294901760, %v925_v21 }
  0xa7   : > { %5389 = vst [vmem:[#allocation97_spill] sm:$0xff] %v4104_v36  ;;  %5390 = vst [vmem:[#allocation98_spill] sm:$0xff] %v4108_v16  ;;  %v892_v53 = vsub.f32 %v4111_v52, %v891_v3  ;;  %v4140_v59 = vsub.f32 %v748_v4, %v885_v12  ;;  %v4142_v36 = vsub.f32 %v745_v60, %v883_v35  ;;  %1667 = vmatprep.mubr.f32.mxu0 %v891_v3 }
  0xa8   : > { %5391 = vst [vmem:[#allocation99_spill] sm:$0xff] %v4111_v52  ;;  %5392 = vst [vmem:[#allocation100_spill] sm:$0xff] %v4120_v0  ;;  %v4147_v52 = vpack.c.bf16 %v887_v63, %v883_v35  ;;  %v932_v0 = vand.u32 4294901760, %v931_v25  ;;  %v949_v4 = vsub.f32 %v3908_v50, %v948_v14  ;;  %2990 = vmatpush1.bf16.msra.mxu1 %v4056_v30  ;;  %3182 = vmatpush1.bf16.msra.mxu0 %v4056_v30 }
  0xa9   : > { %5393 = vst [vmem:[#allocation101_spill] sm:$0xff] %v4127_v42  ;;  %5394 = vst [vmem:[#allocation102_spill] sm:$0xff] %v4133_v19  ;;  %v893_v34 = vand.u32 4294901760, %v892_v53  ;;  %v5396_v12 = vand.u32 4294901760, %v4127_v42  ;;  %v944_v21 = vand.u32 4294901760, %v943_v2  ;;  %v961_v3 = vsub.f32 %v3912_v55, %v960_v48  ;;  %2992 = vmatprep.subr.bf16.mxu1 %v4064_v54  ;;  %3184 = vmatprep.subr.bf16.mxu0 %v4064_v54 }
  0xaa   : > { %5395 = vst [vmem:[#allocation103_spill] sm:$0xff] %v4147_v52  ;;  %v972_v35 = vand.u32 4294901760, %v3918_v58  ;;  %v4163_v63 = vpack.c.bf16 %v936_v15, %v924_v47  ;;  %v955_v40 = vsub.f32 %v3914_v56, %v954_v17  ;;  %v984_v27 = vand.u32 4294901760, %v3928_v5 }
  0xab   : > { %v4157_v60 = vsub.f32 %v4127_v42, %v5396_v12  ;;  %v978_v25 = vand.u32 4294901760, %v3930_v6  ;;  %894 = vmatprep.mubr.f32.mxu1 %v893_v34  ;;  %v4168_v53 = vpack.c.bf16 %v938_v37, %v926_v41  ;;  %v4170_v2 = vpack.c.bf16 %v942_v29, %v930_v61 }
  0xac   : > { %v967_v12 = vsub.f32 %v3916_v57, %v966_v28  ;;  %v990_v30 = vand.u32 4294901760, %v3932_v8  ;;  %v950_v22 = vand.u32 4294901760, %v949_v4  ;;  %v973_v54 = vsub.f32 %v3918_v58, %v972_v35  ;;  %2994 = vmatpush1.bf16.msra.mxu1 %v4070_v43  ;;  %3186 = vmatpush1.bf16.msra.mxu0 %v4070_v43 }
  0xad   : > { %v985_v15 = vsub.f32 %v3928_v5, %v984_v27  ;;  %v996_v47 = vand.u32 4294901760, %v3934_v9  ;;  %v4180_v41 = vpack.c.bf16 %v944_v21, %v932_v0  ;;  %v962_v29 = vand.u32 4294901760, %v961_v3  ;;  %2996 = vmatprep.subr.bf16.mxu1 %v4076_v32  ;;  %3188 = vmatprep.subr.bf16.mxu0 %v4076_v32 }
  0xae   : > { %v4182_v61 = vpack.c.bf16 %v960_v48, %v948_v14  ;;  %v956_v34 = vand.u32 4294901760, %v955_v40  ;;  %v979_v4 = vsub.f32 %v3930_v6, %v978_v25  ;;  %v991_v55 = vsub.f32 %v3932_v8, %v990_v30 }
  0xaf   : > { %v1008_v50 = vand.u32 4294901760, %v3936_v11  ;;  %v968_v5 = vand.u32 4294901760, %v967_v12  ;;  %v1002_v43 = vand.u32 4294901760, %v3940_v13  ;;  %v1014_v0 = vand.u32 4294901760, %v3944_v18 }
  0xb0   : > { %v1020_v21 = vand.u32 4294901760, %v3948_v20  ;;  %v4192_v48 = vpack.c.bf16 %v966_v28, %v954_v17  ;;  %v974_v14 = vand.u32 4294901760, %v973_v54  ;;  %v986_v3 = vand.u32 4294901760, %v985_v15  ;;  %2998 = vmatpush1.bf16.msra.mxu1 %v4088_v10  ;;  %3190 = vmatpush1.bf16.msra.mxu0 %v4088_v10 }
  0xb1   : > { %v997_v37 = vsub.f32 %v3934_v9, %v996_v47  ;;  %v4197_v40 = vpack.c.bf16 %v962_v29, %v950_v22  ;;  %v4199_v32 = vpack.c.bf16 %v984_v27, %v972_v35  ;;  %v1009_v12 = vsub.f32 %v3936_v11, %v1008_v50  ;;  %3000 = vmatprep.subr.bf16.mxu1 %v4094_v26 }
  0xb2   : > { %v1032_v8 = vand.u32 4294901760, %v3952_v24  ;;  %3192 = vmatprep.subr.bf16.mxu0 %v4094_v26  ;;  %v980_v17 = vand.u32 4294901760, %v979_v4  ;;  %v992_v54 = vand.u32 4294901760, %v991_v55  ;;  %v1003_v28 = vsub.f32 %v3940_v13, %v1002_v43 }
  0xb3   : > { %v1015_v15 = vsub.f32 %v3944_v18, %v1014_v0  ;;  %v4207_v9 = vpack.c.bf16 %v968_v5, %v956_v34  ;;  %v4209_v22 = vpack.c.bf16 %v990_v30, %v978_v25  ;;  %v1021_v35 = vsub.f32 %v3948_v20, %v1020_v21 }
  0xb4   : > { %v1026_v27 = vand.u32 4294901760, %v3956_v7  ;;  %v4213_v29 = vpack.c.bf16 %v986_v3, %v974_v14  ;;  %v998_v10 = vand.u32 4294901760, %v997_v37  ;;  %v1033_v11 = vsub.f32 %v3952_v24, %v1032_v8  ;;  %3002 = vmatpush1.bf16.msra.mxu1 %v4108_v16  ;;  %3194 = vmatpush1.bf16.msra.mxu0 %v4108_v16 }
  0xb5   : > { %v1038_v4 = vand.u32 4294901760, %v3958_v38  ;;  %v1010_v55 = vand.u32 4294901760, %v1009_v12  ;;  %v4219_v5 = vpack.c.bf16 %v1008_v50, %v996_v47  ;;  %v1044_v30 = vand.u32 4294901760, %v3960_v39  ;;  %3004 = vmatprep.subr.bf16.mxu1 %v4133_v19  ;;  %3196 = vmatprep.subr.bf16.mxu0 %v4133_v19 }
  0xb6   : > { %v1056_v25 = vand.u32 4294901760, %v3966_v45  ;;  %v4225_v37 = vpack.c.bf16 %v992_v54, %v980_v17  ;;  %v1004_v34 = vand.u32 4294901760, %v1003_v28  ;;  %v1016_v14 = vand.u32 4294901760, %v1015_v15  ;;  %v5398_v28 = vld [vmem:[#allocation47_spill] sm:$0xff] }
  0xb7   : > { %v1050_v3 = vand.u32 4294901760, %v3968_v46  ;;  %v4228_v26 = vpack.c.bf16 %v1014_v0, %v1002_v43  ;;  %v1022_v16 = vand.u32 4294901760, %v1021_v35  ;;  %v1027_v50 = vsub.f32 %v3956_v7, %v1026_v27  ;;  %v5397_v43 = vld [vmem:[#allocation46_spill] sm:$0xff]  ;;  %v5414_v7 = vld [vmem:[#allocation68_spill] sm:$0xff] }
  0xb8   : > { %v1039_v47 = vsub.f32 %v3958_v38, %v1038_v4  ;;  %v1034_v12 = vand.u32 4294901760, %v1033_v11  ;;  %v1045_v24 = vsub.f32 %v3960_v39, %v1044_v30  ;;  %v1057_v20 = vsub.f32 %v3966_v45, %v1056_v25  ;;  %3006 = vmatpush1.bf16.msra.mxu1 %v4147_v52  ;;  %3198 = vmatpush1.bf16.msra.mxu0 %v4147_v52 }
  0xb9   : > { %v1062_v19 = vand.u32 4294901760, %v3974_v1  ;;  %v3019_v17 = vpack.c.bf16 %v1010_v55, %v998_v10  ;;  %v4237_v54 = vpack.c.bf16 %v1032_v8, %v1020_v21  ;;  %v1068_v0 = vand.u32 4294901760, %v5397_v43  ;;  %3008 = vmatprep.subr.bf16.mxu1 %v4168_v53  ;;  %3200 = vmatprep.subr.bf16.mxu0 %v4163_v63  ;;  %v5399_v8 = vld [vmem:[#allocation49_spill] sm:$0xff] }
  0xba   : > { %v1080_v15 = vand.u32 4294901760, %v5398_v28  ;;  %v4243_v11 = vpack.c.bf16 %v1016_v14, %v1004_v34  ;;  %v1051_v35 = vsub.f32 %v3968_v46, %v1050_v3  ;;  %v1028_v39 = vand.u32 4294901760, %v1027_v50  ;;  %v5402_v14 = vld [vmem:[#allocation50_spill] sm:$0xff] }
  0xbb   : > { %v1063_v45 = vsub.f32 %v3974_v1, %v1062_v19  ;;  %v1040_v38 = vand.u32 4294901760, %v1039_v47  ;;  %v4247_v52 = vpack.c.bf16 %v1038_v4, %v1026_v27  ;;  %v1074_v10 = vand.u32 4294901760, %v5399_v8  ;;  %v5404_v47 = vld [vmem:[#allocation53_spill] sm:$0xff] }
  0xbc   : > { %v5400_v21 = vand.u32 4294901760, %v4157_v60  ;;  %v5401_v55 = vand.u32 4294901760, %v4127_v42  ;;  %v4254_v53 = vpack.c.bf16 %v1034_v12, %v1022_v16  ;;  %v1046_v63 = vand.u32 4294901760, %v1045_v24  ;;  %v5403_v24 = vld [vmem:[#allocation51_spill] sm:$0xff] }
  0xbd   : > { %v1058_v34 = vand.u32 4294901760, %v1057_v20  ;;  %v1086_v46 = vand.u32 4294901760, %v5402_v14  ;;  %v4259_v27 = vpack.c.bf16 %v1056_v25, %v1044_v30  ;;  %v1069_v4 = vsub.f32 %v5397_v43, %v1068_v0  ;;  %v5405_v30 = vld [vmem:[#allocation55_spill] sm:$0xff]  ;;  %v5410_v43 = vld [vmem:[#allocation62_spill] sm:$0xff] }
  0xbe   : > { %900 = vmatmul.mubr.f32.vlgmr.msra.gmra.mrb[0].mxu1 %v5400_v21  ;;  %1671 = vmatmul.mubr.f32.vlgmr.msra.gmra.mrb[0].mxu0 %v5401_v55  ;;  %v1081_v60 = vsub.f32 %v5398_v28, %v1080_v15  ;;  %v1052_v16 = vand.u32 4294901760, %v1051_v35  ;;  %v1064_v50 = vand.u32 4294901760, %v1063_v45  ;;  %v1092_v20 = vand.u32 4294901760, %v5403_v24  ;;  %v5407_v35 = vld [vmem:[#allocation58_spill] sm:$0xff] }
  0xbf   : > { %3010 = vmatpush1.bf16.msra.mxu1 %v4180_v41  ;;  %3202 = vmatpush1.bf16.msra.mxu0 %v4170_v2  ;;  %v1104_v12 = vand.u32 4294901760, %v5404_v47  ;;  %v4267_v21 = vpack.c.bf16 %v1040_v38, %v1028_v39  ;;  %v1075_v2 = vsub.f32 %v5399_v8, %v1074_v10  ;;  %v1087_v41 = vsub.f32 %v5402_v14, %v1086_v46  ;;  %v5408_v8 = vld [vmem:[#allocation59_spill] sm:$0xff] }
  0xc0   : > { %3012 = vmatprep.subr.bf16.mxu1 %v4197_v40  ;;  %3204 = vmatprep.subr.bf16.mxu0 %v4182_v61  ;;  %v1098_v25 = vand.u32 4294901760, %v5405_v30  ;;  %v4272_v55 = vpack.c.bf16 %v1058_v34, %v1046_v63  ;;  %v4274_v42 = vpack.c.bf16 %v1062_v19, %v1050_v3  ;;  %v5406_v40 = vld [vmem:[#allocation56_spill] sm:$0xff]  ;;  %v1116_v45 = vand.u32 4294901760, %v5407_v35 }
  0xc1   : > { %v1110_v61 = vand.u32 4294901760, %v5406_v40  ;;  %v1070_v38 = vand.u32 4294901760, %v1069_v4  ;;  %v1082_v39 = vand.u32 4294901760, %v1081_v60  ;;  %v4280_v28 = vpack.c.bf16 %v1080_v15, %v1068_v0  ;;  %v5409_v4 = vld [vmem:[#allocation60_spill] sm:$0xff] }
  0xc2   : > { %v1128_v14 = vand.u32 4294901760, %v5408_v8  ;;  %v4285_v19 = vpack.c.bf16 %v1064_v50, %v1052_v16  ;;  %v1093_v3 = vsub.f32 %v5403_v24, %v1092_v20  ;;  %v1105_v63 = vsub.f32 %v5404_v47, %v1104_v12 }
  0xc3   : > { %3014 = vmatpush1.bf16.msra.mxu1 %v4207_v9  ;;  %3206 = vmatpush1.bf16.msra.mxu0 %v4192_v48  ;;  %v1076_v34 = vand.u32 4294901760, %v1075_v2  ;;  %v1088_v9 = vand.u32 4294901760, %v1087_v41  ;;  %v1099_v48 = vsub.f32 %v5405_v30, %v1098_v25  ;;  %v1122_v60 = vand.u32 4294901760, %v5409_v4  ;;  %v5411_v2 = vld [vmem:[#allocation64_spill] sm:$0xff]  ;;  %v5412_v30 = vld [vmem:[#allocation65_spill] sm:$0xff] }
  0xc4   : > { %3016 = vmatprep.subr.bf16.mxu1 %v4213_v29  ;;  %3208 = vmatprep.subr.bf16.mxu0 %v4199_v32  ;;  %v4291_v0 = vpack.c.bf16 %v1086_v46, %v1074_v10  ;;  %v1111_v15 = vsub.f32 %v5406_v40, %v1110_v61  ;;  %v1117_v29 = vsub.f32 %v5407_v35, %v1116_v45  ;;  %v1134_v32 = vand.u32 4294901760, %v5410_v43  ;;  %v5413_v40 = vld [vmem:[#allocation67_spill] sm:$0xff] }
  0xc5   : > { %v4298_v16 = vpack.c.bf16 %v1082_v39, %v1070_v38  ;;  %v1129_v50 = vsub.f32 %v5408_v8, %v1128_v14  ;;  %v1140_v41 = vand.u32 4294901760, %v5411_v2  ;;  %v1152_v47 = vand.u32 4294901760, %v5412_v30 }
  0xc6   : > { %v1094_v46 = vand.u32 4294901760, %v1093_v3  ;;  %v1106_v10 = vand.u32 4294901760, %v1105_v63  ;;  %v4304_v35 = vpack.c.bf16 %v1104_v12, %v1092_v20  ;;  %v1146_v24 = vand.u32 4294901760, %v5413_v40 }
  0xc7   : > { %3018 = vmatpush1.bf16.msra.mxu1 %v4225_v37  ;;  %3210 = vmatpush1.bf16.msra.mxu0 %v4209_v22  ;;  %v4307_v37 = vpack.c.bf16 %v1088_v9, %v1076_v34  ;;  %v1100_v22 = vand.u32 4294901760, %v1099_v48  ;;  %v1123_v38 = vsub.f32 %v5409_v4, %v1122_v60  ;;  %v1135_v39 = vsub.f32 %v5410_v43, %v1134_v32  ;;  %v5417_v43 = vld [vmem:[#allocation74_spill] sm:$0xff] }
  0xc8   : > { %3020 = vmatprep.subr.bf16.mxu1 %v3019_v17  ;;  %3212 = vmatprep.subr.bf16.mxu0 %v4219_v5  ;;  %v1112_v8 = vand.u32 4294901760, %v1111_v15  ;;  %v1118_v1 = vand.u32 4294901760, %v1117_v29  ;;  %v1158_v18 = vand.u32 4294901760, %v5414_v7  ;;  %v5415_v17 = vld [vmem:[#allocation70_spill] sm:$0xff]  ;;  %v1130_v5 = vand.u32 4294901760, %v1129_v50 }
  0xc9   : > { %v1164_v13 = vand.u32 4294901760, %v5415_v17  ;;  %v1141_v20 = vsub.f32 %v5411_v2, %v1140_v41  ;;  %v1153_v12 = vsub.f32 %v5412_v30, %v1152_v47  ;;  %v1176_v3 = vand.u32 4294901760, %v4040_v33  ;;  %v5465_v4 = vld [vmem:[#allocation82_spill] sm:$0xff] }
  0xca   : > { %v4320_v63 = vpack.c.bf16 %v1110_v61, %v1098_v25  ;;  %v1147_v34 = vsub.f32 %v5413_v40, %v1146_v24  ;;  %v1159_v9 = vsub.f32 %v5414_v7, %v1158_v18  ;;  %v4325_v15 = vpack.c.bf16 %v1128_v14, %v1116_v45 }
  0xcb   : > { %3022 = vmatpush1.bf16.msra.mxu1 %v4243_v11  ;;  %3214 = vmatpush1.bf16.msra.mxu0 %v4228_v26  ;;  %v5416_v11 = vld [vmem:[#allocation73_spill] sm:$0xff]  ;;  %v3035_v26 = vpack.c.bf16 %v1106_v10, %v1094_v46  ;;  %v1124_v29 = vand.u32 4294901760, %v1123_v38  ;;  %v1136_v50 = vand.u32 4294901760, %v1135_v39  ;;  %v3037_v30 = vpack.c.bf16 %v1112_v8, %v1100_v22 }
  0xcc   : > { %3024 = vmatprep.subr.bf16.mxu1 %v4254_v53  ;;  %3216 = vmatprep.subr.bf16.mxu0 %v4237_v54  ;;  %v1170_v48 = vand.u32 4294901760, %v5416_v11  ;;  %v1165_v2 = vsub.f32 %v5415_v17, %v1164_v13  ;;  %v1177_v53 = vsub.f32 %v4040_v33, %v1176_v3  ;;  %v1182_v54 = vand.u32 4294901760, %v5417_v43  ;;  %v5468_v17 = vld [vmem:[#allocation86_spill] sm:$0xff] }
  0xcd   : > { %v4332_v25 = vpack.c.bf16 %v1130_v5, %v1118_v1  ;;  %v4334_v61 = vpack.c.bf16 %v1134_v32, %v1122_v60  ;;  %v1142_v46 = vand.u32 4294901760, %v1141_v20  ;;  %v1154_v14 = vand.u32 4294901760, %v1153_v12  ;;  %v5418_v1 = vld [vmem:[#allocation76_spill] sm:$0xff]  ;;  %v5419_v5 = vld [vmem:[#allocation79_spill] sm:$0xff] }
  0xce   : > { %v4338_v8 = vpack.c.bf16 %v1152_v47, %v1140_v41  ;;  %v1148_v45 = vand.u32 4294901760, %v1147_v34  ;;  %v1160_v10 = vand.u32 4294901760, %v1159_v9  ;;  %v1171_v22 = vsub.f32 %v5416_v11, %v1170_v48  ;;  %v5420_v20 = vld [vmem:[#allocation80_spill] sm:$0xff]  ;;  %v5421_v34 = vld [vmem:[#allocation83_spill] sm:$0xff] }
  0xcf   : > { %3026 = vmatpush1.bf16.msra.mxu1 %v4267_v21  ;;  %3218 = vmatpush1.bf16.msra.mxu0 %v4247_v52  ;;  %v4341_v38 = vpack.c.bf16 %v1136_v50, %v1124_v29  ;;  %v1183_v52 = vsub.f32 %v5417_v43, %v1182_v54  ;;  %v1188_v21 = vand.u32 4294901760, %v5418_v1  ;;  %v1200_v60 = vand.u32 4294901760, %v4054_v31  ;;  %v5428_v43 = vld [vmem:[#allocation96_spill] sm:$0xff] }
  0xd0   : > { %3028 = vmatprep.subr.bf16.mxu1 %v4272_v55  ;;  %3220 = vmatprep.subr.bf16.mxu0 %v4259_v27  ;;  %v1166_v32 = vand.u32 4294901760, %v1165_v2  ;;  %v1178_v39 = vand.u32 4294901760, %v1177_v53  ;;  %v1194_v55 = vand.u32 4294901760, %v5419_v5  ;;  %v1206_v27 = vand.u32 4294901760, %v5420_v20 }
  0xd1   : > { %v4350_v47 = vpack.c.bf16 %v1154_v14, %v1142_v46  ;;  %v4352_v41 = vpack.c.bf16 %v1158_v18, %v1146_v24  ;;  %v1212_v12 = vand.u32 4294901760, %v4066_v51  ;;  %v1224_v9 = vand.u32 4294901760, %v5421_v34  ;;  %v5422_v14 = vld [vmem:[#allocation86_spill] sm:$0xff] }
  0xd2   : > { %v4358_v2 = vpack.c.bf16 %v1160_v10, %v1148_v45  ;;  %v4360_v29 = vpack.c.bf16 %v1176_v3, %v1164_v13  ;;  %v1172_v50 = vand.u32 4294901760, %v1171_v22  ;;  %v4363_v53 = vpack.c.bf16 %v1182_v54, %v1170_v48  ;;  %v5423_v22 = vld [vmem:[#allocation88_spill] sm:$0xff] }
  0xd3   : > { %3030 = vmatpush1.bf16.msra.mxu1 %v4285_v19  ;;  %3222 = vmatpush1.bf16.msra.mxu0 %v4274_v42  ;;  %v1218_v19 = vand.u32 4294901760, %v4072_v44  ;;  %v1184_v42 = vand.u32 4294901760, %v1183_v52  ;;  %v1189_v18 = vsub.f32 %v5418_v1, %v1188_v21  ;;  %v1201_v24 = vsub.f32 %v4054_v31, %v1200_v60 }
  0xd4   : > { %3032 = vmatprep.subr.bf16.mxu1 %v4298_v16  ;;  %3224 = vmatprep.subr.bf16.mxu0 %v4280_v28  ;;  %v4367_v46 = vpack.c.bf16 %v1178_v39, %v1166_v32  ;;  %v1195_v16 = vsub.f32 %v5419_v5, %v1194_v55  ;;  %v1207_v28 = vsub.f32 %v5420_v20, %v1206_v27  ;;  %v1230_v45 = vand.u32 4294901760, %v5422_v14  ;;  %v5424_v32 = vld [vmem:[#allocation89_spill] sm:$0xff] }
  0xd5   : > { %v4374_v13 = vpack.c.bf16 %v1200_v60, %v1188_v21  ;;  %v1213_v3 = vsub.f32 %v4066_v51, %v1212_v12  ;;  %v1225_v48 = vsub.f32 %v5421_v34, %v1224_v9  ;;  %v1219_v54 = vsub.f32 %v4072_v44, %v1218_v19  ;;  %v5425_v60 = vld [vmem:[#allocation91_spill] sm:$0xff] }
  0xd6   : > { %v1231_v10 = vsub.f32 %v5422_v14, %v1230_v45  ;;  %v1236_v52 = vand.u32 4294901760, %v5423_v22  ;;  %v4383_v39 = vpack.c.bf16 %v1184_v42, %v1172_v50  ;;  %v1202_v21 = vand.u32 4294901760, %v1201_v24  ;;  %v684_v42 = vld [vmem:[%s3757_s28 + $0x18] sm:$0x1] }
  0xd7   : > { %3034 = vmatpush1.bf16.msra.mxu1 %v4307_v37  ;;  %3226 = vmatpush1.bf16.msra.mxu0 %v4291_v0  ;;  %v1248_v37 = vand.u32 4294901760, %v5424_v32  ;;  %v1190_v0 = vand.u32 4294901760, %v1189_v18  ;;  %v1242_v51 = vand.u32 4294901760, %v5425_v60  ;;  %v1196_v20 = vand.u32 4294901760, %v1195_v16 }
  0xd8   : > { %3036 = vmatprep.subr.bf16.mxu1 %v3035_v26  ;;  %3228 = vmatprep.subr.bf16.mxu0 %v4304_v35  ;;  %v1208_v34 = vand.u32 4294901760, %v1207_v28  ;;  %v5426_v26 = vld [vmem:[#allocation92_spill] sm:$0xff]  ;;  %v5427_v35 = vld [vmem:[#allocation94_spill] sm:$0xff]  ;;  %v4389_v14 = vpack.c.bf16 %v1206_v27, %v1194_v55  ;;  %v1214_v44 = vand.u32 4294901760, %v1213_v3  ;;  %v1226_v1 = vand.u32 4294901760, %v1225_v48 }
  0xd9   : > { %v1254_v5 = vand.u32 4294901760, %v5426_v26  ;;  %v1260_v31 = vand.u32 4294901760, %v5427_v35  ;;  %v1272_v50 = vand.u32 4294901760, %v5428_v43  ;;  %v1220_v18 = vand.u32 4294901760, %v1219_v54 }
  0xda   : > { %v1232_v24 = vand.u32 4294901760, %v1231_v10  ;;  %v1237_v16 = vsub.f32 %v5423_v22, %v1236_v52  ;;  %v3051_v28 = vpack.c.bf16 %v1202_v21, %v1190_v0  ;;  %v1243_v55 = vsub.f32 %v5425_v60, %v1242_v51  ;;  %v683_v10 = vld [vmem:[%s3757_s28 + $0x10] sm:$0x1]  ;;  %s2726_s28 = sadd.s32 %s2939_s4, %s3767_s6 }
  0xdb   : > { %3038 = vmatpush1.bf16.msra.mxu1 %v3037_v30  ;;  %3230 = vmatpush1.bf16.msra.mxu0 %v4320_v63  ;;  %v1249_v30 = vsub.f32 %v5424_v32, %v1248_v37  ;;  %v4397_v63 = vpack.c.bf16 %v1224_v9, %v1212_v12  ;;  %v1255_v27 = vsub.f32 %v5426_v26, %v1254_v5  ;;  %v4405_v48 = vand.u32 4294901760, %v684_v42 }
  0xdc   : > { %3040 = vmatprep.subr.bf16.mxu1 %v4332_v25  ;;  %3232 = vmatprep.subr.bf16.mxu0 %v4325_v15  ;;  %v4401_v3 = vpack.c.bf16 %v1208_v34, %v1196_v20  ;;  %v1261_v25 = vsub.f32 %v5427_v35, %v1260_v31  ;;  %v1273_v15 = vsub.f32 %v5428_v43, %v1272_v50  ;;  %v1238_v34 = vand.u32 4294901760, %v1237_v16 }
  0xdd   : > { %v4409_v54 = vpack.c.bf16 %v1226_v1, %v1214_v44  ;;  %v4411_v12 = vpack.c.bf16 %v1230_v45, %v1218_v19  ;;  %v4413_v9 = vpack.c.bf16 %v1248_v37, %v1236_v52  ;;  %v4418_v20 = vpack.c.bf16 %v1232_v24, %v1220_v18  ;;  %v5430_v45 = vld [vmem:[#allocation100_spill] sm:$0xff] }
  0xde   : > { %v1250_v0 = vand.u32 4294901760, %v1249_v30  ;;  %v5291_v21 = vand.u32 4294901760, %v4116_v23  ;;  %v1256_v43 = vand.u32 4294901760, %v1255_v27  ;;  %v5290_v44 = vand.u32 4294901760, %v4118_v62 }
  0xdf   : > { %3042 = vmatpush1.bf16.msra.mxu1 %v4341_v38  ;;  %3234 = vmatpush1.bf16.msra.mxu0 %v4334_v61  ;;  %v1244_v38 = vand.u32 4294901760, %v1243_v55  ;;  %v4423_v61 = vsub.f32 %v684_v42, %v4405_v48  ;;  %v1262_v1 = vand.u32 4294901760, %v1261_v25  ;;  %v1274_v19 = vand.u32 4294901760, %v1273_v15 }
  0xe0   : > { %3044 = vmatprep.subr.bf16.mxu1 %v4350_v47  ;;  %3236 = vmatprep.subr.bf16.mxu0 %v4338_v8  ;;  %v5289_v52 = vand.u32 4294901760, %v5430_v45  ;;  %v4426_v47 = vand.u32 4294901760, %v683_v10  ;;  %v4430_v8 = vpack.c.bf16 %v1254_v5, %v1242_v51  ;;  %v5288_v18 = vand.u32 4294901760, %v4140_v59 }
  0xe1   : > { %5429 = vst [vmem:[#allocation67_spill] sm:$0xff] %v4423_v61  ;;  %v907_v37 = vand.u32 4294901760, %v4423_v61  ;;  %v5287_v24 = vand.u32 4294901760, %v4142_v36  ;;  %v4437_v42 = vpack.c.bf16 %v1250_v0, %v1238_v34  ;;  %v4439_v16 = vpack.c.bf16 %v1272_v50, %v1260_v31  ;;  %v5433_v0 = vld [vmem:[#allocation27_spill] sm:$0xff] }
  0xe2   : > { %v4449_v51 = vsub.f32 %v4116_v23, %v5291_v21  ;;  %v4458_v31 = vsub.f32 %v4118_v62, %v5290_v44  ;;  %v3599_v30 = vmov 0   ;;  %v4471_v27 = vsub.f32 %v4140_v59, %v5288_v18  ;;  %v5441_v44 = vld [vmem:[#allocation37_spill] sm:$0xff]  ;;  %v5450_v18 = vld [vmem:[#allocation50_spill] sm:$0xff]  ;;  %v750_v34 = vld [vmem:[#allocation3 + $0x8] sm:$0x1] }
  0xe3   : > { %3046 = vmatpush1.bf16.msra.mxu1 %v4358_v2  ;;  %3238 = vmatpush1.bf16.msra.mxu0 %v4352_v41  ;;  %v4442_v2 = vsub.f32 %v683_v10, %v4426_v47  ;;  %v4444_v41 = vpack.c.bf16 %v1256_v43, %v1244_v38  ;;  %v908_v5 = vsub.f32 %v4423_v61, %v907_v37  ;;  %v749_v10 = vld [vmem:[#allocation3] sm:$0xff]  ;;  %v5452_v61 = vld [vmem:[#allocation53_spill] sm:$0xff] }
  0xe4   : > { %3048 = vmatprep.subr.bf16.mxu1 %v4367_v46  ;;  %3240 = vmatprep.subr.bf16.mxu0 %v4360_v29  ;;  %v5294_v46 = vand.u32 4294901760, %v4149_v49  ;;  %v4453_v29 = vpack.c.bf16 %v1274_v19, %v1262_v1  ;;  %v4463_v43 = vsub.f32 %v5430_v45, %v5289_v52  ;;  %v4476_v25 = vsub.f32 %v4142_v36, %v5287_v24  ;;  %v5434_v19 = vld [vmem:[#allocation28_spill] sm:$0xff]  ;;  %v5438_v24 = vld [vmem:[#allocation95_spill] sm:$0xff]  ;;  %v5442_v38 = vld [vmem:[#allocation38_spill] sm:$0xff] }
  0xe5   : > { %5431 = vst [vmem:[#allocation68_spill] sm:$0xff] %v4442_v2  ;;  %1679 = vmatprep.mubr.f32.mxu0 %v907_v37  ;;  %v913_v50 = vand.u32 4294901760, %v4442_v2  ;;  %3460 = vset.pattern.permute.xlu0 %v3599_v30  ;;  %v909_v55 = vand.u32 4294901760, %v908_v5  ;;  %v5435_v37 = vld [vmem:[#allocation29_spill] sm:$0xff]  ;;  %v5460_v21 = vld [vmem:[#allocation74_spill] sm:$0xff]  ;;  %v5464_v5 = vld [vmem:[#allocation80_spill] sm:$0xff] }
  0xe6   : > { %v1303_v1 = vsub.f32 %v4149_v49, %v5294_v46  ;;  %753 = vperm.xlu0 %3460, %v749_v10   ;;  %v1280_v10 = vand.u32 4294901760, %v4458_v31  ;;  %v5459_v52 = vld [vmem:[#allocation65_spill] sm:$0xff]  ;;  %v5466_v30 = vld [vmem:[#allocation83_spill] sm:$0xff]  ;;  %v1286_v31 = vand.u32 4294901760, %v4463_v43 }
  0xe7   : > { %3050 = vmatpush1.bf16.msra.mxu1 %v4383_v39  ;;  %3242 = vmatpush1.bf16.msra.mxu0 %v4363_v53  ;;  %v914_v53 = vsub.f32 %v4442_v2, %v913_v50  ;;  %v5432_v39 = vld [vmem:[#allocation26_spill] sm:$0xff]  ;;  %v5463_v2 = vld [vmem:[#allocation79_spill] sm:$0xff] }
  0xe8   : > { %3052 = vmatprep.subr.bf16.mxu1 %v3051_v28  ;;  %3244 = vmatprep.subr.bf16.mxu0 %v4374_v13  ;;  %v5448_v28 = vld [vmem:[#allocation47_spill] sm:$0xff]  ;;  %v5462_v13 = vld [vmem:[#allocation77_spill] sm:$0xff]  ;;  %v3117_v46 = vpack.c.bf16 %v5464_v5, %v5463_v2  ;;  %v1304_v43 = vand.u32 4294901760, %v1303_v1 }
  0xe9   : > { %910 = vmatprep.mubr.f32.mxu1 %v909_v55  ;;  %1683 = vmatmul.mubr.f32.gmra.mrb[2].mxu0 %v913_v50  ;;  %v915_v15 = vand.u32 4294901760, %v914_v53  ;;  %v1268_v50 = vand.u32 4294901760, %v4449_v51  ;;  %v5446_v53 = vld [vmem:[#allocation44_spill] sm:$0xff]  ;;  %v5550_v2 = vld [vmem:[#allocation87_spill] sm:$0xff] }
  0xea   : > { %1946 = vmatprep.mubr.f32.mxu0 %v5438_v24  ;;  %v5454_v51 = vld [vmem:[#allocation56_spill] sm:$0xff]  ;;  %758 = vperm.xlu0 %3460, %v750_v34   ;;  %v5472_v34 = vand.u32 4294901760, %v5430_v45 }
  0xeb   : > { %3054 = vmatpush1.bf16.msra.mxu1 %v4401_v3  ;;  %3246 = vmatpush1.bf16.msra.mxu0 %v4389_v14  ;;  %v5451_v3 = vld [vmem:[#allocation51_spill] sm:$0xff]  ;;  %v5461_v55 = vld [vmem:[#allocation76_spill] sm:$0xff] }
  0xec   : > { %3056 = vmatprep.subr.bf16.mxu1 %v4409_v54  ;;  %3248 = vmatprep.subr.bf16.mxu0 %v4397_v63  ;;  %v5467_v63 = vld [vmem:[#allocation85_spill] sm:$0xff]  ;;  %v1298_v54 = vand.u32 4294901760, %v4471_v27  ;;  %v5471_v27 = vand.u32 4294901760, %v4118_v62 }
  0xed   : > { %916 = vmatmul.mubr.f32.gmra.mrb[2].mxu1 %v915_v15  ;;  %v1292_v15 = vand.u32 4294901760, %v4476_v25  ;;  %v5476_v25 = vld [vmem:[#allocation16_spill] sm:$0xff] }
  0xee   : > { %1307 = vmatprep.mubr.f32.mxu1 %v5438_v24  ;;  %v3067_v33 = vpack.c.bf16 %v1298_v54, %v1286_v31  ;;  %v5479_v54 = vld [vmem:[#allocation20_spill] sm:$0xff] }
  0xef   : > { %3058 = vmatpush1.bf16.msra.mxu1 %v4418_v20  ;;  %3250 = vmatpush1.bf16.msra.mxu0 %v4411_v12  ;;  %v5469_v20 = vld [vmem:[#allocation96_spill] sm:$0xff] }
  0xf0   : > { %3060 = vmatprep.subr.bf16.mxu1 %v4437_v42  ;;  %3252 = vmatprep.subr.bf16.mxu0 %v4413_v9  ;;  %v3065_v9 = vpack.c.bf16 %v1280_v10, %v1268_v50  ;;  %v5470_v42 = vand.u32 4294901760, %v4116_v23  ;;  %v5474_v50 = vand.u32 4294901760, %v4142_v36  ;;  %v5475_v10 = vand.u32 4294901760, %v4149_v49 }
  0xf1   : > { %v5553_v5 = vpack.c.bf16 %v5469_v20, %v5427_v35  ;;  %v5560_v35 = vld [vmem:[#allocation103_spill] sm:$0xff] }
  0xf2   : > { %v3257_v12 = vpack.c.bf16 %v5471_v27, %v5470_v42  ;;  %v3261_v42 = vpack.c.bf16 %v5475_v10, %v5474_v50  ;;  %v5480_v27 = vld [vmem:[#allocation13_spill] sm:$0xff]  ;;  %v5489_v50 = vld [vmem:[#allocation22_spill] sm:$0xff]  ;;  %v5490_v10 = vld [vmem:[#allocation99_spill] sm:$0xff] }
  0xf3   : > { %3062 = vmatpush1.bf16.msra.mxu1 %v4444_v41  ;;  %3254 = vmatpush1.bf16.msra.mxu0 %v4430_v8  ;;  %v5473_v41 = vand.u32 4294901760, %v4140_v59  ;;  %v3069_v8 = vpack.c.bf16 %v1304_v43, %v1292_v15  ;;  %v5482_v15 = vld [vmem:[#allocation23_spill] sm:$0xff] }
  0xf4   : > { %3064 = vmatprep.subr.bf16.mxu1 %v4453_v29  ;;  %3256 = vmatprep.subr.bf16.mxu0 %v4439_v16  ;;  %v5477_v29 = vld [vmem:[#allocation17_spill] sm:$0xff]  ;;  %v5478_v16 = vld [vmem:[#allocation19_spill] sm:$0xff] }
  0xf5   : > { %v3259_v14 = vpack.c.bf16 %v5473_v41, %v5472_v34  ;;  %v3071_v1 = vpack.c.bf16 %v5477_v29, %v5476_v25  ;;  %v3073_v31 = vpack.c.bf16 %v5479_v54, %v5478_v16  ;;  %v5486_v34 = vpack.c.bf16 %v3916_v57, %v3914_v56  ;;  %v5487_v41 = vld [vmem:[#allocation18_spill] sm:$0xff]  ;;  %v5492_v25 = vld [vmem:[#allocation24_spill] sm:$0xff]  ;;  %v5494_v57 = vld [vmem:[#allocation25_spill] sm:$0xff] }
  0xf6   : > { %v5493_v56 = vpack.c.bf16 %v5435_v37, %v5434_v19  ;;  %v5499_v16 = vld [vmem:[#allocation35_spill] sm:$0xff]  ;;  %v5504_v19 = vld [vmem:[#allocation36_spill] sm:$0xff]  ;;  %v5505_v37 = vld [vmem:[#allocation41_spill] sm:$0xff] }
  0xf7   : > { %3066 = vmatpush1.bf16.msra.mxu1 %v3065_v9  ;;  %3258 = vmatpush1.bf16.msra.mxu0 %v3257_v12  ;;  %v5481_v12 = vld [vmem:[#allocation21_spill] sm:$0xff] }
  0xf8   : > { %3068 = vmatprep.subr.bf16.mxu1 %v3067_v33  ;;  %3260 = vmatprep.subr.bf16.mxu0 %v3259_v14  ;;  %v3075_v43 = vpack.c.bf16 %v5482_v15, %v5481_v12  ;;  %v5483_v9 = vld [vmem:[#allocation97_spill] sm:$0xff]  ;;  %v5484_v33 = vld [vmem:[#allocation14_spill] sm:$0xff]  ;;  %v5485_v14 = vld [vmem:[#allocation15_spill] sm:$0xff] }
  0xf9   : > { %v5508_v12 = vld [vmem:[#allocation40_spill] sm:$0xff]  ;;  %v5509_v15 = vld [vmem:[#allocation42_spill] sm:$0xff] }
  0xfb   : > { %3070 = vmatpush1.bf16.msra.mxu1 %v3069_v8  ;;  %3262 = vmatpush1.bf16.msra.mxu0 %v3261_v42  ;;  %v5488_v8 = vpack.c.bf16 %v5432_v39, %v3918_v58  ;;  %v5491_v42 = vpack.c.bf16 %v5433_v0, %v3930_v6  ;;  %v5495_v58 = vld [vmem:[#allocation32_spill] sm:$0xff]  ;;  %v5496_v39 = vld [vmem:[#allocation31_spill] sm:$0xff]  ;;  %v5502_v6 = vld [vmem:[#allocation33_spill] sm:$0xff]  ;;  %v5503_v0 = vpack.c.bf16 %v5442_v38, %v5441_v44 }
  0xfc   : > { %3072 = vmatprep.subr.bf16.mxu1 %v3071_v1  ;;  %3264 = vmatprep.subr.bf16.mxu0 %v5480_v27  ;;  %v5497_v29 = vpack.c.bf16 %v5495_v58, %v5496_v39  ;;  %v5498_v1 = vld [vmem:[#allocation30_spill] sm:$0xff]  ;;  %v5514_v44 = vld [vmem:[#allocation45_spill] sm:$0xff]  ;;  %v5528_v39 = vld [vmem:[#allocation60_spill] sm:$0xff] }
  0xfd   : > { %v5515_v38 = vld [vmem:[#allocation49_spill] sm:$0xff]  ;;  %v5527_v58 = vld [vmem:[#allocation62_spill] sm:$0xff] }
  0xfe   : > { %1309 = vmatmul.mubr.f32.vlgmr.msra.gmra.mrb[0].mxu1 %v5483_v9  ;;  %1948 = vmatmul.mubr.f32.vlgmr.msra.gmra.mrb[0].mxu0 %v5483_v9 }
  0xff   : > { %3074 = vmatpush1.bf16.msra.mxu1 %v3073_v31  ;;  %3266 = vmatpush1.bf16.msra.mxu0 %v5484_v33  ;;  %v5506_v31 = vld [vmem:[#allocation39_spill] sm:$0xff] }
 0x100   : > { %3076 = vmatprep.subr.bf16.mxu1 %v3075_v43  ;;  %3268 = vmatprep.subr.bf16.mxu0 %v5485_v14  ;;  %v5507_v27 = vpack.c.bf16 %v5505_v37, %v5506_v31  ;;  %v5510_v43 = vpack.c.bf16 %v5446_v53, %v5509_v15  ;;  %v5511_v33 = vld [vmem:[#allocation43_spill] sm:$0xff]  ;;  %v5512_v14 = vld [vmem:[#allocation46_spill] sm:$0xff]  ;;  %v5519_v53 = vld [vmem:[#allocation52_spill] sm:$0xff]  ;;  %v5540_v37 = vpack.c.bf16 %v5460_v21, %v5416_v11 }
 0x101   : > { %1315 = vmatprep.mubr.f32.mxu1 %v4405_v48  ;;  %1954 = vmatprep.mubr.f32.mxu0 %v4405_v48  ;;  %v5542_v31 = vpack.c.bf16 %v5462_v13, %v5461_v55  ;;  %v5546_v11 = vld [vmem:[#allocation81_spill] sm:$0xff]  ;;  %v5547_v21 = vpack.c.bf16 %v5468_v17, %v5467_v63  ;;  %v5548_v13 = vld [vmem:[#allocation84_spill] sm:$0xff]  ;;  %v5549_v55 = vpack.c.bf16 %v5424_v32, %v5423_v22  ;;  %v5556_v22 = vld [vmem:[#allocation98_spill] sm:$0xff] }
 0x102   : > { %1317 = vmatmul.mubr.f32.gmra.mrb[2].mxu1 %v4426_v47  ;;  %1956 = vmatmul.mubr.f32.gmra.mrb[2].mxu0 %v4426_v47  ;;  %v5554_v17 = vld [vmem:[#allocation93_spill] sm:$0xff]  ;;  %v5557_v32 = vpack.c.bf16 %v4140_v59, %v5430_v45 }
 0x103   : > { %3078 = vmatpush1.bf16.msra.mxu1 %v5486_v34  ;;  %3270 = vmatpush1.bf16.msra.mxu0 %v5487_v41  ;;  %v5513_v34 = vpack.c.bf16 %v5448_v28, %v5512_v14  ;;  %v5516_v41 = vpack.c.bf16 %v5450_v18, %v5515_v38  ;;  %v5522_v28 = vld [vmem:[#allocation54_spill] sm:$0xff]  ;;  %v5526_v18 = vld [vmem:[#allocation57_spill] sm:$0xff] }
 0x104   : > { %3080 = vmatprep.subr.bf16.mxu1 %v5488_v8  ;;  %3272 = vmatprep.subr.bf16.mxu0 %v5489_v50  ;;  %v5517_v8 = vld [vmem:[#allocation48_spill] sm:$0xff]  ;;  %v5518_v50 = vpack.c.bf16 %v5452_v61, %v5451_v3  ;;  %v5530_v61 = vld [vmem:[#allocation61_spill] sm:$0xff] }
 0x105   : > { %1517 = vmatprep.mubr.f32.mxu1 %v5490_v10  ;;  %2091 = vmatprep.mubr.f32.mxu0 %v5438_v24  ;;  %v5500_v24 = vld [vmem:[#allocation34_spill] sm:$0xff]  ;;  %v5520_v10 = vld [vmem:[#allocation55_spill] sm:$0xff]  ;;  %v5531_v3 = vld [vmem:[#allocation64_spill] sm:$0xff] }
 0x106   : > { %v5501_v54 = vpack.c.bf16 %v5499_v16, %v5500_v24  ;;  %v5534_v16 = vpack.c.bf16 %v5414_v7, %v5413_v40  ;;  %v5535_v24 = vld [vmem:[#allocation66_spill] sm:$0xff]  ;;  %v5543_v7 = vld [vmem:[#allocation75_spill] sm:$0xff]  ;;  %v5561_v63 = vld [vmem:[#allocation101_spill] sm:$0xff] }
 0x107   : > { %3082 = vmatpush1.bf16.msra.mxu1 %v5491_v42  ;;  %3274 = vmatpush1.bf16.msra.mxu0 %v5492_v25  ;;  %v5521_v42 = vpack.c.bf16 %v5454_v51, %v5520_v10  ;;  %v5523_v25 = vld [vmem:[#allocation59_spill] sm:$0xff]  ;;  %v5544_v40 = vld [vmem:[#allocation78_spill] sm:$0xff] }
 0x108   : > { %3084 = vmatprep.subr.bf16.mxu1 %v5493_v56  ;;  %3276 = vmatprep.subr.bf16.mxu0 %v5494_v57  ;;  %v5524_v56 = vld [vmem:[#allocation58_spill] sm:$0xff]  ;;  %v5533_v51 = vld [vmem:[#allocation63_spill] sm:$0xff] }
 0x109   : > { %v5525_v57 = vpack.c.bf16 %v5523_v25, %v5524_v56 }
 0x10b   : > { %3086 = vmatpush1.bf16.msra.mxu1 %v5497_v29  ;;  %3278 = vmatpush1.bf16.msra.mxu0 %v5498_v1  ;;  %v5529_v29 = vpack.c.bf16 %v5527_v58, %v5528_v39  ;;  %v5532_v1 = vpack.c.bf16 %v5459_v52, %v5531_v3  ;;  %v5541_v52 = vld [vmem:[#allocation72_spill] sm:$0xff] }
 0x10c   : > { %3088 = vmatprep.subr.bf16.mxu1 %v5501_v54  ;;  %3280 = vmatprep.subr.bf16.mxu0 %v5502_v6  ;;  %v5536_v54 = vld [vmem:[#allocation71_spill] sm:$0xff]  ;;  %v5537_v6 = vld [vmem:[#allocation70_spill] sm:$0xff] }
 0x10f   : > { %3090 = vmatpush1.bf16.msra.mxu1 %v5503_v0  ;;  %3282 = vmatpush1.bf16.msra.mxu0 %v5504_v19  ;;  %v5538_v0 = vpack.c.bf16 %v5536_v54, %v5537_v6  ;;  %v5539_v19 = vld [vmem:[#allocation69_spill] sm:$0xff] }
 0x110   : > { %3092 = vmatprep.subr.bf16.mxu1 %v5507_v27  ;;  %3284 = vmatprep.subr.bf16.mxu0 %v5508_v12  ;;  %v5545_v27 = vpack.c.bf16 %v5466_v30, %v5465_v4  ;;  %v5552_v4 = vld [vmem:[#allocation90_spill] sm:$0xff]  ;;  %v5555_v30 = vpack.c.bf16 %v4118_v62, %v4116_v23  ;;  %v5562_v23 = vld [vmem:[#allocation67_spill] sm:$0xff]  ;;  %v5563_v62 = vld [vmem:[#allocation68_spill] sm:$0xff] }
 0x113   : > { %3094 = vmatpush1.bf16.msra.mxu1 %v5510_v43  ;;  %3286 = vmatpush1.bf16.msra.mxu0 %v5511_v33 }
 0x114   : > { %3096 = vmatprep.subr.bf16.mxu1 %v5513_v34  ;;  %3288 = vmatprep.subr.bf16.mxu0 %v5514_v44 }
 0x117   : > { %3098 = vmatpush1.bf16.msra.mxu1 %v5516_v41  ;;  %3290 = vmatpush1.bf16.msra.mxu0 %v5517_v8 }
 0x118   : > { %3100 = vmatprep.subr.bf16.mxu1 %v5518_v50  ;;  %3292 = vmatprep.subr.bf16.mxu0 %v5519_v53 }
 0x11b   : > { %3102 = vmatpush1.bf16.msra.mxu1 %v5521_v42  ;;  %3294 = vmatpush1.bf16.msra.mxu0 %v5522_v28 }
 0x11c   : > { %3104 = vmatprep.subr.bf16.mxu1 %v5525_v57  ;;  %3296 = vmatprep.subr.bf16.mxu0 %v5526_v18 }
 0x11f   : > { %3106 = vmatpush1.bf16.msra.mxu1 %v5529_v29  ;;  %3298 = vmatpush1.bf16.msra.mxu0 %v5530_v61 }
 0x120   : > { %3108 = vmatprep.subr.bf16.mxu1 %v5532_v1  ;;  %3300 = vmatprep.subr.bf16.mxu0 %v5533_v51 }
 0x123   : > { %3110 = vmatpush1.bf16.msra.mxu1 %v5534_v16  ;;  %3302 = vmatpush1.bf16.msra.mxu0 %v5535_v24 }
 0x124   : > { %3112 = vmatprep.subr.bf16.mxu1 %v5538_v0  ;;  %3304 = vmatprep.subr.bf16.mxu0 %v5539_v19 }
 0x127   : > { %3114 = vmatpush1.bf16.msra.mxu1 %v5540_v37  ;;  %3306 = vmatpush1.bf16.msra.mxu0 %v5541_v52 }
 0x128   : > { %3116 = vmatprep.subr.bf16.mxu1 %v5542_v31  ;;  %3308 = vmatprep.subr.bf16.mxu0 %v5543_v7 }
 0x12b   : > { %3118 = vmatpush1.bf16.msra.mxu1 %v3117_v46  ;;  %3310 = vmatpush1.bf16.msra.mxu0 %v5544_v40  ;;  %v5551_v46 = vpack.c.bf16 %v5426_v26, %v5425_v60  ;;  %v5558_v60 = vld [vmem:[#allocation102_spill] sm:$0xff]  ;;  %v5559_v26 = vpack.c.bf16 %v4149_v49, %v4142_v36 }
 0x12c   : > { %3120 = vmatprep.subr.bf16.mxu1 %v5545_v27  ;;  %3312 = vmatprep.subr.bf16.mxu0 %v5546_v11  ;;  %v3601_v11 = vmov 683565275  }
 0x12f   : > { %3122 = vmatpush1.bf16.msra.mxu1 %v5547_v21  ;;  %3314 = vmatpush1.bf16.msra.mxu0 %v5548_v13 }
 0x130   : > { %3124 = vmatprep.subr.bf16.mxu1 %v5549_v55  ;;  %3316 = vmatprep.subr.bf16.mxu0 %v5550_v2  ;;  %v3602_v2 = vmov 2475754826  }
 0x133   : > { %3126 = vmatpush1.bf16.msra.mxu1 %v5551_v46  ;;  %3318 = vmatpush1.bf16.msra.mxu0 %v5552_v4  ;;  %v3603_v4 = vmov 2131351028  }
 0x134   : > { %3128 = vmatprep.subr.bf16.mxu1 %v5553_v5  ;;  %3320 = vmatprep.subr.bf16.mxu0 %v5554_v17  ;;  %v3604_v17 = vmov 2102212464  }
 0x137   : > { %3130 = vmatpush1.bf16.msra.mxu1 %v5555_v30  ;;  %3322 = vmatpush1.bf16.msra.mxu0 %v5556_v22  ;;  %v3605_v22 = vmov 920167782  }
 0x138   : > { %3132 = vmatprep.subr.bf16.mxu1 %v5557_v32  ;;  %3324 = vmatprep.subr.bf16.mxu0 %v5558_v60 }
 0x13b   : > { %3134 = vmatpush1.bf16.msra.mxu1 %v5559_v26  ;;  %3326 = vmatpush1.bf16.msra.mxu0 %v5560_v35 }
 0x13e   : > { %1520 = vmatmul.mubr.f32.vlgmr.msra.gmra.mrb[0].mxu1 %v5561_v63  ;;  %2093 = vmatmul.mubr.f32.vlgmr.msra.gmra.mrb[0].mxu0 %v5483_v9 }
 0x13f   : > { %1527 = vmatprep.mubr.f32.mxu1 %v5562_v23  ;;  %2099 = vmatprep.mubr.f32.mxu0 %v4405_v48 }
 0x142   : > { %1530 = vmatmul.mubr.f32.gmra.mrb[2].mxu1 %v5563_v62  ;;  %2101 = vmatmul.mubr.f32.gmra.mrb[2].mxu0 %v4426_v47  ;;  %v3606_v62 = vmov 1326507024  }
 0x165   : > { %v754_v59 = vpop.permute.xlu0 %753 }
 0x169   : > { %v759_v33 = vpop.permute.xlu0 %758 }
 0x211   : > { %v1521_v45 = vpop.f32.mrb[0].mxu1  ;;  %v2094_v20 = vpop.f32.mrb[0].mxu0 }
 0x212   : > { %v3327_v12 = vadd.f32 %v1521_v45, %v754_v59  ;;  %v1523_v49 = vpop.f32.mrb[1].mxu1  ;;  %v2096_v36 = vpop.f32.mrb[1].mxu0 }
 0x213   : > { %v3329_v15 = vadd.f32 %v1523_v49, %v754_v59 }
 0x214   : > { %v3328_v43 = vadd.f32 %v3327_v12, %v2094_v20 }
 0x215   : > { %v3330_v14 = vadd.f32 %v3329_v15, %v2096_v36  ;;  %v1531_v34 = vpop.f32.mrb[2].mxu1  ;;  %v2102_v9 = vpop.f32.mrb[2].mxu0 }
 0x216   : > { %v4711_v44 = vmul.f32 6.2831855, %v3328_v43  ;;  %v3331_v38 = vadd.f32 %v1531_v34, %v759_v33  ;;  %v1533_v48 = vpop.f32.mrb[3].mxu1  ;;  %v2104_v41 = vpop.f32.mrb[3].mxu0 }
 0x217   : > { %v4713_v8 = vmul.f32 6.2831855, %v3330_v14  ;;  %v3333_v47 = vadd.f32 %v1533_v48, %v759_v33  ;;  %2109 = vrot.lane.b32.xlu1 %v3330_v14, %s3600_s23 }
 0x218   : > { %v2123_v50 = vand.u32 2147483647, %v4711_v44  ;;  %v2126_v53 = vand.u32 2139095040, %v4711_v44  ;;  %v3332_v25 = vadd.f32 %v3331_v38, %v2102_v9  ;;  %vm2125_vm0 = vcmp.lt.s32.totalorder %v4711_v44, 0 }
 0x219   : > { %v2227_v10 = vand.u32 2147483647, %v4713_v8  ;;  %v2230_v42 = vand.u32 2139095040, %v4713_v8  ;;  %v4723_v58 = vadd.f32 %v3333_v47, %v2104_v41 }
 0x21a   : > { %v2127_v28 = vshrl.u32 %v2126_v53, 23  ;;  %v2130_v56 = vand.u32 8388607, %v2123_v50  ;;  %v4725_v29 = vmul.f32 6.2831855, %v3332_v25 }
 0x21b   : > { %v2231_v57 = vshrl.u32 %v2230_v42, 23  ;;  %v2234_v18 = vand.u32 8388607, %v2227_v10  ;;  %2111 = vrot.lane.b32.xlu1 %v4723_v58, %s3600_s23  ;;  %vm4810_vm15 = vcmp.le.f32.partialorder %v2123_v50, 0.7853982  ;;  %s5076_s23 = sld [smem:[#allocation7 + $0x8]] }
 0x21c   : > { %v2913_v39 = vadd.s32 4294967169, %v2127_v28  ;;  %v2131_v1 = vor.u32 8388608, %v2130_v56  ;;  %v2334_v24 = vand.u32 2139095040, %v4725_v29  ;;  %v2331_v40 = vand.u32 2147483647, %v4725_v29 }
 0x21d   : > { %v2917_v61 = vadd.s32 4294967169, %v2231_v57  ;;  %v2235_v51 = vor.u32 8388608, %v2234_v18 }
 0x21e   : > { %v2133_v3 = vadd.s32 1, %v2913_v39  ;;  %v2335_v6 = vshrl.u32 %v2334_v24, 23  ;;  %v4729_v52 = vshll.u32 %v2131_v1, 8 }
 0x21f   : > { %v2237_v16 = vadd.s32 1, %v2917_v61  ;;  %v4733_v7 = vshll.u32 %v2235_v51, 8 }
 0x220   : > { %vm2134_vm2 = vcmp.gt.s32.totalorder %v2133_v3, 0  ;;  %v4737_v55 = vadd.s32 4294967169, %v2335_v6 }
 0x221   : > { %v2135_v54 = vsel %vm2134_vm2, %v2133_v3, 0  ;;  %vm2238_vm3 = vcmp.gt.s32.totalorder %v2237_v16, 0 }
 0x222   : > { %v2136_v0 = vshrl.u32 %v2135_v54, 5  ;;  %v2137_v19 = vand.u32 31, %v2135_v54  ;;  %v2239_v37 = vsel %vm2238_vm3, %v2237_v16, 0 }
 0x223   : > { %v4731_v31 = vshrl.u32 %v2239_v37, 5  ;;  %v2241_v13 = vand.u32 31, %v2239_v37 }
 0x224   : > { %v2138_v27 = vsub.s32 32, %v2137_v19  ;;  %v2140_v21 = vshll.u32 %v3601_v11, %v2137_v19  ;;  %v2143_v46 = vshll.u32 %v3602_v2, %v2137_v19  ;;  %v2146_v5 = vshll.u32 %v3603_v4, %v2137_v19 }
 0x225   : > { %v2149_v30 = vshll.u32 %v3604_v17, %v2137_v19  ;;  %v2152_v32 = vshll.u32 %v3605_v22, %v2137_v19  ;;  %vm2155_vm4 = vcmp.lt.s32.totalorder %v2136_v0, 1  ;;  %vm2156_vm5 = vcmp.lt.s32.totalorder %v2136_v0, 2 }
 0x226   : > { %v2141_v60 = vshrl.u32 %v3602_v2, %v2138_v27  ;;  %v2144_v26 = vshrl.u32 %v3603_v4, %v2138_v27  ;;  %v2147_v35 = vshrl.u32 %v3604_v17, %v2138_v27  ;;  %v2139_v63 = vshrl.u32 %v3601_v11, %v2138_v27 }
 0x227   : > { %v2150_v23 = vshrl.u32 %v3605_v22, %v2138_v27  ;;  %v2153_v59 = vshrl.u32 %v3606_v62, %v2138_v27  ;;  %v2242_v49 = vsub.s32 32, %v2241_v13  ;;  %vm2157_vm6 = vcmp.lt.s32.totalorder %v2136_v0, 3 }
 0x228   : > { %v2142_v45 = vor.u32 %v2141_v60, %v2140_v21  ;;  %v2145_v20 = vor.u32 %v2144_v26, %v2143_v46  ;;  %v2148_v12 = vor.u32 %v2147_v35, %v2146_v5  ;;  %vm2158_vm7 = vcmp.lt.s32.totalorder %v2136_v0, 4 }
 0x229   : > { %v2151_v36 = vor.u32 %v2150_v23, %v2149_v30  ;;  %v2154_v15 = vor.u32 %v2153_v59, %v2152_v32  ;;  %v2244_v41 = vshll.u32 %v3601_v11, %v2241_v13  ;;  %v2245_v42 = vshrl.u32 %v3602_v2, %v2242_v49 }
 0x22a   : > { %v2159_v43 = vsel %vm2155_vm4, %v2139_v63, %v2142_v45  ;;  %v2160_v33 = vsel %vm2158_vm7, %v2148_v12, 2102212464  ;;  %v2163_v14 = vsel %vm2155_vm4, %v2142_v45, %v2145_v20  ;;  %v2167_v34 = vsel %vm2155_vm4, %v2145_v20, %v2148_v12 }
 0x22b   : > { %v2161_v9 = vsel %vm2157_vm6, %v2145_v20, %v2160_v33  ;;  %v2164_v38 = vsel %vm2158_vm7, %v2151_v36, 920167782  ;;  %v2168_v48 = vsel %vm2158_vm7, %v2154_v15, 1326507024  ;;  %v2247_v28 = vshll.u32 %v3602_v2, %v2241_v13 }
 0x22c   : > { %v2165_v47 = vsel %vm2157_vm6, %v2148_v12, %v2164_v38  ;;  %v2169_v53 = vsel %vm2157_vm6, %v2151_v36, %v2168_v48  ;;  %v2162_v25 = vsel %vm2156_vm5, %v2159_v43, %v2161_v9  ;;  %v2248_v18 = vshrl.u32 %v3603_v4, %v2242_v49 }
 0x22d   : > { %v2166_v56 = vsel %vm2156_vm5, %v2163_v14, %v2165_v47  ;;  %v2170_v57 = vsel %vm2156_vm5, %v2167_v34, %v2169_v53  ;;  %v2246_v51 = vor.u32 %v2245_v42, %v2244_v41  ;;  %v2250_v24 = vshll.u32 %v3603_v4, %v2241_v13 }
 0x22e   : > { %v4760_v39 = vmul.u32.u64.low %v4729_v52, %v2170_v57  ;;  %v4761_v61 = vmul.u32.u64.high %v4729_v52, %v2170_v57, %v4760_v39  ;;  %v4764_v3 = vmul.u32.u64.low %v4729_v52, %v2166_v56  ;;  %v4765_v1 = vmul.u32.u64.high %v4729_v52, %v2166_v56, %v4764_v3 }
 0x22f   : > { %v2249_v16 = vor.u32 %v2248_v18, %v2247_v28  ;;  %v2251_v54 = vshrl.u32 %v3604_v17, %v2242_v49  ;;  %v2243_v6 = vshrl.u32 %v3601_v11, %v2242_v49  ;;  %v2253_v0 = vshll.u32 %v3604_v17, %v2241_v13 }
 0x230   : > { %v2254_v19 = vshrl.u32 %v3605_v22, %v2242_v49  ;;  %v2257_v37 = vshrl.u32 %v3606_v62, %v2242_v49  ;;  %v2178_v27 = vmul.u32 %v4729_v52, %v2162_v25  ;;  %v2256_v46 = vshll.u32 %v3605_v22, %v2241_v13 }
 0x231   : > { %v2252_v21 = vor.u32 %v2251_v54, %v2250_v24  ;;  %vm2259_vm8 = vcmp.lt.s32.totalorder %v4731_v31, 1  ;;  %vm2180_vm9 = vc.u32 %v4761_v61, %v4764_v3  ;;  %v2181_v5 = vadd.s32 1, %v4765_v1 }
 0x232   : > { %v2255_v30 = vor.u32 %v2254_v19, %v2253_v0  ;;  %vm2260_vm10 = vcmp.lt.s32.totalorder %v4731_v31, 2  ;;  %v2258_v32 = vor.u32 %v2257_v37, %v2256_v46  ;;  %vm2261_vm11 = vcmp.lt.s32.totalorder %v4731_v31, 3 }
 0x233   : > { %vm2262_vm12 = vcmp.lt.s32.totalorder %v4731_v31, 4  ;;  %v2267_v60 = vsel %vm2259_vm8, %v2246_v51, %v2249_v16  ;;  %v2182_v52 = vsel %vm2180_vm9, %v2181_v5, %v4765_v1  ;;  %v2271_v13 = vsel %vm2259_vm8, %v2249_v16, %v2252_v21 }
 0x234   : > { %v2264_v26 = vsel %vm2262_vm12, %v2252_v21, 2102212464  ;;  %v2268_v35 = vsel %vm2262_vm12, %v2255_v30, 920167782  ;;  %v2183_v63 = vadd.s32 %v2182_v52, %v2178_v27  ;;  %v2263_v23 = vsel %vm2259_vm8, %v2243_v6, %v2246_v51 }
 0x235   : > { %v2269_v59 = vsel %vm2261_vm11, %v2252_v21, %v2268_v35  ;;  %v2272_v45 = vsel %vm2262_vm12, %v2258_v32, 1326507024  ;;  %v2265_v20 = vsel %vm2261_vm11, %v2249_v16, %v2264_v26  ;;  %v2341_v36 = vadd.s32 1, %v4737_v55 }
 0x236   : > { %v2270_v12 = vsel %vm2260_vm10, %v2267_v60, %v2269_v59  ;;  %v2273_v49 = vsel %vm2261_vm11, %v2255_v30, %v2272_v45  ;;  %v2184_v15 = vadd.s32 536870912, %v2183_v63  ;;  %v2266_v48 = vsel %vm2260_vm10, %v2263_v23, %v2265_v20 }
 0x237   : > { %v2274_v43 = vsel %vm2260_vm10, %v2271_v13, %v2273_v49  ;;  %v4788_v33 = vmul.u32.u64.low %v4733_v7, %v2270_v12  ;;  %v4789_v14 = vmul.u32.u64.high %v4733_v7, %v2270_v12, %v4788_v33  ;;  %vm2342_vm13 = vcmp.gt.s32.totalorder %v2341_v36, 0 }
 0x238   : > { %v4793_v34 = vmul.u32.u64.low %v4733_v7, %v2274_v43  ;;  %v4794_v9 = vmul.u32.u64.high %v4733_v7, %v2274_v43, %v4793_v34  ;;  %v2185_v38 = vshrl.u32 %v2184_v15, 30  ;;  %v2343_v41 = vsel %vm2342_vm13, %v2341_v36, 0 }
 0x239   : > { %v2345_v55 = vand.u32 31, %v2343_v41  ;;  %v2285_v53 = vadd.s32 1, %v4789_v14  ;;  %v2338_v42 = vand.u32 8388607, %v2331_v40  ;;  %v2282_v28 = vmul.u32 %v4733_v7, %v2266_v48 }
 0x23a   : > { %v2186_v47 = vshll.u32 %v2185_v38, 30  ;;  %vm2284_vm14 = vc.u32 %v4794_v9, %v4788_v33  ;;  %v4805_v56 = vmul.f32 6.2831855, %v4723_v58  ;;  %v2209_v18 = vsub.s32 4, %v2185_v38 }
 0x23b   : > { %v2346_v25 = vsub.s32 32, %v2345_v55  ;;  %v2286_v31 = vsel %vm2284_vm14, %v2285_v53, %v4789_v14  ;;  %v2339_v51 = vor.u32 8388608, %v2338_v42  ;;  %v2179_v16 = vadd.s32 %v4764_v3, %v4761_v61 }
 0x23c   : > { %v2187_v57 = vsub.s32 %v2183_v63, %v2186_v47  ;;  %v2287_v39 = vadd.s32 %v2286_v31, %v2282_v28  ;;  %v2438_v54 = vand.u32 2139095040, %v4805_v56  ;;  %v2344_v0 = vshrl.u32 %v2343_v41, 5 }
 0x23d   : > { %v2349_v58 = vshrl.u32 %v3602_v2, %v2346_v25  ;;  %v2352_v19 = vshrl.u32 %v3603_v4, %v2346_v25  ;;  %v2355_v50 = vshrl.u32 %v3604_v17, %v2346_v25  ;;  %v2210_v37 = vsel %vm2125_vm0, %v2209_v18, %v2185_v38 }
 0x23e   : > { %v2189_v7 = vsub.s32 0, %v2187_v57  ;;  %v2288_v24 = vadd.s32 536870912, %v2287_v39  ;;  %v2348_v21 = vshll.u32 %v3601_v11, %v2345_v55  ;;  %v2358_v61 = vshrl.u32 %v3605_v22, %v2346_v25 }
 0x23f   : > { %v2351_v46 = vshll.u32 %v3602_v2, %v2345_v55  ;;  %v2354_v5 = vshll.u32 %v3603_v4, %v2345_v55  ;;  %v2361_v30 = vshrl.u32 %v3606_v62, %v2346_v25  ;;  %v2357_v52 = vshll.u32 %v3604_v17, %v2345_v55 }
 0x240   : > { %v2914_v6 = vmin.u32 %v2189_v7, %v2187_v57  ;;  %v4822_v27 = vshrl.u32 %v2288_v24, 30  ;;  %v2350_v60 = vor.u32 %v2349_v58, %v2348_v21  ;;  %v4831_v26 = vshll.u32 %v2339_v51, 8 }
 0x241   : > { %v2353_v13 = vor.u32 %v2352_v19, %v2351_v46  ;;  %v2356_v63 = vor.u32 %v2355_v50, %v2354_v5  ;;  %v2360_v23 = vshll.u32 %v3605_v22, %v2345_v55  ;;  %v2212_v59 = vsel %vm4810_vm15, 0, %v2210_v37 }
 0x242   : > { %v2191_v3 = vclz %v2914_v6  ;;  %v2290_v32 = vshll.u32 %v4822_v27, 30  ;;  %v2359_v20 = vor.u32 %v2358_v61, %v2357_v52  ;;  %v2439_v12 = vshrl.u32 %v2438_v54, 23 }
 0x243   : > { %v2347_v49 = vshrl.u32 %v3601_v11, %v2346_v25  ;;  %v2362_v36 = vor.u32 %v2361_v30, %v2360_v23  ;;  %vm2363_vm2 = vcmp.lt.s32.totalorder %v2344_v0, 1  ;;  %vm2365_vm3 = vcmp.lt.s32.totalorder %v2344_v0, 3 }
 0x244   : > { %v2915_v35 = vadd.s32 4294967294, %v2191_v3  ;;  %v4836_v45 = vsub.s32 %v2287_v39, %v2290_v32  ;;  %vm2366_vm4 = vcmp.lt.s32.totalorder %v2344_v0, 4  ;;  %v2371_v48 = vsel %vm2363_vm2, %v2350_v60, %v2353_v13 }
 0x245   : > { %v2368_v38 = vsel %vm2366_vm4, %v2356_v63, 2102212464  ;;  %v2372_v47 = vsel %vm2366_vm4, %v2359_v20, 920167782  ;;  %v2375_v53 = vsel %vm2363_vm2, %v2353_v13, %v2356_v63  ;;  %v2376_v31 = vsel %vm2366_vm4, %v2362_v36, 1326507024 }
 0x246   : > { %vm2916_vm1 = vcmp.lt.s32.totalorder %v2915_v35, 0  ;;  %v2293_v43 = vsub.s32 0, %v4836_v45  ;;  %v2373_v25 = vsel %vm2365_vm3, %v2356_v63, %v2372_v47  ;;  %vm2364_vm5 = vcmp.lt.s32.totalorder %v2344_v0, 2 }
 0x247   : > { %v2194_v15 = vsel %vm2916_vm1, 0, %v2915_v35  ;;  %v2367_v39 = vsel %vm2363_vm2, %v2347_v49, %v2350_v60  ;;  %v2369_v7 = vsel %vm2365_vm3, %v2353_v13, %v2368_v38  ;;  %v2374_v58 = vsel %vm2364_vm5, %v2371_v48, %v2373_v25 }
 0x248   : > { %v2195_v14 = vsub.s32 32, %v2194_v15  ;;  %v2199_v34 = vsub.s32 4294967266, %v2194_v15  ;;  %v2196_v41 = vshll.u32 %v2187_v57, %v2194_v15  ;;  %v2918_v55 = vmin.u32 %v2293_v43, %v4836_v45 }
 0x249   : > { %v2377_v57 = vsel %vm2365_vm3, %v2359_v20, %v2376_v31  ;;  %v2435_v61 = vand.u32 2147483647, %v4805_v56  ;;  %v2283_v3 = vadd.s32 %v4788_v33, %v4794_v9  ;;  %v2370_v0 = vsel %vm2364_vm5, %v2367_v39, %v2369_v7 }
 0x24a   : > { %v2197_v42 = vshrl.u32 %v2179_v16, %v2195_v14  ;;  %v2200_v28 = vadd.s32 127, %v2199_v34  ;;  %v2295_v18 = vclz %v2918_v55  ;;  %v2378_v6 = vsel %vm2364_vm5, %v2375_v53, %v2377_v57 }
 0x24b   : > { %v4848_v19 = vmul.u32.u64.low %v4831_v26, %v2374_v58  ;;  %v4849_v16 = vmul.u32.u64.high %v4831_v26, %v2374_v58, %v4848_v19  ;;  %v4853_v37 = vmul.u32.u64.low %v4831_v26, %v2378_v6  ;;  %v4854_v21 = vmul.u32.u64.high %v4831_v26, %v2378_v6, %v4853_v37 }
 0x24c   : > { %v2198_v51 = vor.u32 %v2197_v42, %v2196_v41  ;;  %v2201_v24 = vshll.u32 %v2200_v28, 23  ;;  %v2919_v54 = vadd.s32 4294967294, %v2295_v18  ;;  %v2925_v46 = vadd.s32 4294967169, %v2439_v12 }
 0x24d   : > { %v2216_v32 = vadd.s32 3, %v2212_v59  ;;  %v2313_v13 = vsub.s32 4, %v4822_v27  ;;  %v2389_v63 = vadd.s32 1, %v4849_v16  ;;  %v2386_v20 = vmul.u32 %v4831_v26, %v2370_v0 }
 0x24e   : > { %v2202_v50 = vor.u32 4788187, %v2201_v24  ;;  %vm2920_vm6 = vcmp.lt.s32.totalorder %v2919_v54, 0  ;;  %v2205_v30 = vcvt.s32.f32 %v2198_v51  ;;  %vm2388_vm7 = vc.u32 %v4854_v21, %v4848_v19 }
 0x24f   : > { %v2298_v60 = vsel %vm2920_vm6, 0, %v2919_v54  ;;  %v2445_v33 = vadd.s32 1, %v2925_v46  ;;  %v2390_v59 = vsel %vm2388_vm7, %v2389_v63, %v4849_v16  ;;  %vm2229_vm8 = vcmp.lt.s32.totalorder %v4713_v8, 0 }
 0x250   : > { %v2203_v5 = vand.u32 2147483647, %v2202_v50  ;;  %v2299_v52 = vsub.s32 32, %v2298_v60  ;;  %v2303_v35 = vsub.s32 4294967266, %v2298_v60  ;;  %v2300_v9 = vshll.u32 %v4836_v45, %v2298_v60 }
 0x251   : > { %v2391_v15 = vadd.s32 %v2390_v59, %v2386_v20  ;;  %vm2446_vm9 = vcmp.gt.s32.totalorder %v2445_v33, 0  ;;  %v2314_v26 = vsel %vm2229_vm8, %v2313_v13, %v4822_v27  ;;  %vm4874_vm10 = vcmp.le.f32.partialorder %v2227_v10, 0.7853982 }
 0x252   : > { %v2206_v23 = vmul.f32 %v2205_v30, %v2203_v5  ;;  %v2301_v12 = vshrl.u32 %v2283_v3, %v2299_v52  ;;  %v2304_v49 = vadd.s32 127, %v2303_v35  ;;  %v2447_v34 = vsel %vm2446_vm9, %v2445_v33, 0 }
 0x253   : > { %v2392_v48 = vadd.s32 536870912, %v2391_v15  ;;  %v2449_v41 = vand.u32 31, %v2447_v34  ;;  %v4881_v47 = vand.u32 3, %v2216_v32  ;;  %v2442_v27 = vand.u32 8388607, %v2435_v61 }
 0x254   : > { %v2207_v36 = vxor.u32 2147483648, %v2206_v23  ;;  %v2302_v43 = vor.u32 %v2301_v12, %v2300_v9  ;;  %v2305_v14 = vshll.u32 %v2304_v49, 23  ;;  %v2316_v42 = vsel %vm4874_vm10, 0, %v2314_v26 }
 0x255   : > { %v4887_v10 = vshrl.u32 %v2392_v48, 30  ;;  %v2450_v28 = vsub.s32 32, %v2449_v41  ;;  %v4890_v39 = vadd.s32 3, %v2316_v42  ;;  %vm2222_vm11 = vcmp.eq.s32.totalorder %v4881_v47, 2 }
 0x256   : > { %v2208_v38 = vsel %vm2125_vm0, %v2207_v36, %v2206_v23  ;;  %v2306_v53 = vor.u32 4788187, %v2305_v14  ;;  %v2309_v31 = vcvt.s32.f32 %v2302_v43  ;;  %v2443_v58 = vor.u32 8388608, %v2442_v27 }
 0x257   : > { %v2211_v55 = vsel %vm4810_vm15, %v4711_v44, %v2208_v38  ;;  %v2394_v18 = vshll.u32 %v4887_v10, 30  ;;  %v2453_v7 = vshrl.u32 %v3602_v2, %v2450_v28  ;;  %v2456_v51 = vshrl.u32 %v3603_v4, %v2450_v28 }
 0x258   : > { %3461 = vcosq.f32 %v2211_v55  ;;  %v2307_v25 = vand.u32 2147483647, %v2306_v53  ;;  %v4897_v57 = vshrl.u32 %v2447_v34, 5  ;;  %v2462_v54 = vshrl.u32 %v3605_v22, %v2450_v28 }
 0x259   : > { %3463 = vsinq.f32 %v2211_v55  ;;  %v4895_v24 = vsub.s32 %v2391_v15, %v2394_v18  ;;  %vm2219_vm12 = vcmp.eq.s32.totalorder %v4881_v47, 0  ;;  %v2452_v16 = vshll.u32 %v3601_v11, %v2449_v41 }
 0x25a   : > { %v2310_v1 = vmul.f32 %v2309_v31, %v2307_v25  ;;  %v2455_v50 = vshll.u32 %v3602_v2, %v2449_v41  ;;  %v2459_v37 = vshrl.u32 %v3604_v17, %v2450_v28  ;;  %vm2218_vm13 = vcmp.lt.s32.totalorder %v4881_v47, 2  ;;  %v4951_v47 = vld [vmem:[%s377_s3] sm:$0x3]  ;;  %s5061_s3 = sld [smem:[#allocation7 + $0x7]] }
 0x25b   : > { %v2387_v3 = vadd.s32 %v4848_v19, %v4854_v21  ;;  %v2397_v0 = vsub.s32 0, %v4895_v24  ;;  %v2458_v46 = vshll.u32 %v3603_v4, %v2449_v41  ;;  %v2461_v5 = vshll.u32 %v3604_v17, %v2449_v41 }
 0x25c   : > { %v2311_v6 = vxor.u32 2147483648, %v2310_v1  ;;  %vm2215_vm14 = vweird.f32 %v4711_v44  ;;  %v2454_v32 = vor.u32 %v2453_v7, %v2452_v16  ;;  %v2457_v2 = vor.u32 %v2456_v51, %v2455_v50 }
 0x25d   : > { %v2465_v60 = vshrl.u32 %v3606_v62, %v2450_v28  ;;  %v2922_v19 = vmin.u32 %v2397_v0, %v4895_v24  ;;  %v2463_v21 = vor.u32 %v2462_v54, %v2461_v5  ;;  %v2464_v4 = vshll.u32 %v3605_v22, %v2449_v41 }
 0x25e   : > { %v2312_v30 = vsel %vm2229_vm8, %v2311_v6, %v2310_v1  ;;  %v2451_v17 = vshrl.u32 %v3601_v11, %v2450_v28  ;;  %v2460_v35 = vor.u32 %v2459_v37, %v2458_v46  ;;  %vm2467_vm15 = vcmp.lt.s32.totalorder %v4897_v57, 1 }
 0x25f   : > { %v2315_v52 = vsel %vm4874_vm10, %v4713_v8, %v2312_v30  ;;  %v2483_v13 = vshll.u32 %v2443_v58, 8  ;;  %v2399_v23 = vclz %v2922_v19  ;;  %v2466_v20 = vor.u32 %v2465_v60, %v2464_v4 }
 0x260   : > { %vm2468_vm0 = vcmp.lt.s32.totalorder %v4897_v57, 2  ;;  %vm2469_vm1 = vcmp.lt.s32.totalorder %v4897_v57, 3  ;;  %3465 = vcosq.f32 %v2315_v52  ;;  %vm2470_vm2 = vcmp.lt.s32.totalorder %v4897_v57, 4 }
 0x261   : > { %v2475_v22 = vsel %vm2467_vm15, %v2454_v32, %v2457_v2  ;;  %3467 = vsinq.f32 %v2315_v52  ;;  %v2923_v9 = vadd.s32 4294967294, %v2399_v23  ;;  %v2476_v12 = vsel %vm2470_vm2, %v2463_v21, 920167782 }
 0x262   : > { %v3462_v63 = vpop.eup %3461  ;;  %v2472_v59 = vsel %vm2470_vm2, %v2460_v35, 2102212464  ;;  %v2477_v36 = vsel %vm2469_vm1, %v2460_v35, %v2476_v12  ;;  %v2479_v15 = vsel %vm2467_vm15, %v2457_v2, %v2460_v35  ;;  %v2480_v26 = vsel %vm2470_vm2, %v2466_v20, 1326507024 }
 0x263   : > { %v3464_v62 = vpop.eup %3463  ;;  %v2223_v33 = vxor.u32 2147483648, %v3462_v63  ;;  %vm2924_vm3 = vcmp.lt.s32.totalorder %v2923_v9, 0  ;;  %v2478_v14 = vsel %vm2468_vm0, %v2475_v22, %v2477_v36  ;;  %v2471_v45 = vsel %vm2467_vm15, %v2451_v17, %v2454_v32  ;;  %v2544_v17 = vld [vmem:[%s3759_s11] sm:$0xff] }
 0x264   : > { %v2220_v11 = vxor.u32 2147483648, %v3464_v62  ;;  %v2402_v38 = vsel %vm2924_vm3, 0, %v2923_v9  ;;  %v2481_v48 = vsel %vm2469_vm1, %v2463_v21, %v2480_v26  ;;  %v2473_v27 = vsel %vm2469_vm1, %v2457_v2, %v2472_v59 }
 0x265   : > { %v2224_v49 = vsel %vm2222_vm11, %v2223_v33, %v3464_v62  ;;  %v2403_v55 = vsub.s32 32, %v2402_v38  ;;  %v2407_v53 = vsub.s32 4294967266, %v2402_v38  ;;  %v2404_v42 = vshll.u32 %v4895_v24, %v2402_v38 }
 0x266   : > { %v2221_v43 = vsel %vm2219_vm12, %v3462_v63, %v2220_v11  ;;  %v2482_v28 = vsel %vm2468_vm0, %v2479_v15, %v2481_v48  ;;  %v4956_v25 = vmul.u32.u64.low %v2483_v13, %v2478_v14  ;;  %v4957_v31 = vmul.u32.u64.high %v2483_v13, %v2478_v14, %v4956_v25 }
 0x267   : > { %v2225_v34 = vsel %vm2218_vm13, %v2221_v43, %v2224_v49  ;;  %v2405_v44 = vshrl.u32 %v2387_v3, %v2403_v55  ;;  %v2408_v18 = vadd.s32 127, %v2407_v53  ;;  %v2551_v51 = vsub.f32 1.0, %v4951_v47 }
 0x268   : > { %v2226_v41 = vsel %vm2215_vm14, nan, %v2225_v34  ;;  %v4960_v1 = vmul.u32.u64.low %v2483_v13, %v2482_v28  ;;  %v4961_v7 = vmul.u32.u64.high %v2483_v13, %v2482_v28, %v4960_v1  ;;  %v2474_v6 = vsel %vm2468_vm0, %v2471_v45, %v2473_v27 }
 0x269   : > { %v2406_v58 = vor.u32 %v2405_v44, %v2404_v42  ;;  %v2409_v54 = vshll.u32 %v2408_v18, 23  ;;  %v2555_v24 = vlaneseq  ;;  %v2493_v50 = vadd.s32 1, %v4957_v31 }
 0x26a   : > { %v3466_v16 = vpop.eup %3465  ;;  %v2321_v0 = vand.u32 3, %v4890_v39  ;;  %v2490_v3 = vmul.u32 %v2483_v13, %v2474_v6  ;;  %vm2492_vm4 = vc.u32 %v4961_v7, %v4956_v25  ;;  %v2550_v5 = vmul.f32 0.003, %v4951_v47 }
 0x26b   : > { %v3468_v37 = vpop.eup %3467  ;;  %v2410_v46 = vor.u32 4788187, %v2409_v54  ;;  %v2552_v30 = vmul.f32 0.033333335, %v2551_v51  ;;  %v2413_v2 = vcvt.s32.f32 %v2406_v58  ;;  %v2494_v57 = vsel %vm2492_vm4, %v2493_v50, %v4957_v31 }
 0x26c   : > { %v4973_v60 = vshrl.u32 %v2555_v24, 7  ;;  %v2324_v52 = vxor.u32 2147483648, %v3468_v37  ;;  %v2327_v19 = vxor.u32 2147483648, %v3466_v16  ;;  %v2495_v21 = vadd.s32 %v2494_v57, %v2490_v3 }
 0x26d   : > { %v2411_v32 = vand.u32 2147483647, %v2410_v46  ;;  %vm2323_vm5 = vcmp.eq.s32.totalorder %v2321_v0, 0  ;;  %vm2326_vm6 = vcmp.eq.s32.totalorder %v2321_v0, 2  ;;  %v2553_v35 = vadd.f32 %v2552_v30, %v2550_v5 }
 0x26e   : > { %v2496_v4 = vadd.s32 536870912, %v2495_v21  ;;  %v2557_v13 = vsub.s32 0, %v4973_v60  ;;  %v2325_v63 = vsel %vm2323_vm5, %v3466_v16, %v2324_v52  ;;  %v2328_v23 = vsel %vm2326_vm6, %v2327_v19, %v3468_v37 }
 0x26f   : > { %v2414_v39 = vmul.f32 %v2413_v2, %v2411_v32  ;;  %vm2322_vm7 = vcmp.lt.s32.totalorder %v2321_v0, 2  ;;  %vm2333_vm8 = vcmp.lt.s32.totalorder %v4725_v29, 0  ;;  %v2546_v22 = vunpack.c.l.bf16 %v2544_v17 }
 0x270   : > { %v4977_v62 = vshrl.u32 %v2496_v4, 30  ;;  %v2539_v11 = vmul.f32 0.1, %v2226_v41  ;;  %v2329_v9 = vsel %vm2322_vm7, %v2325_v63, %v2328_v23  ;;  %v4982_v12 = vrot.slane %v4951_v47, %v2557_v13 }
 0x271   : > { %v2415_v20 = vxor.u32 2147483648, %v2414_v39  ;;  %v4984_v49 = vrot.slane %v2553_v35, %v2557_v13  ;;  %vm2319_vm9 = vweird.f32 %v4713_v8  ;;  %v2561_v15 = vsub.s32 1, %v4973_v60 }
 0x272   : > { %v2498_v33 = vshll.u32 %v4977_v62, 30  ;;  %v2330_v43 = vsel %vm2319_vm9, nan, %v2329_v9  ;;  %vm4994_vm10 = vcmp.le.f32.partialorder %v2331_v40, 0.7853982  ;;  %v2565_v38 = vmul.f32 %v4982_v12, %v2539_v11 }
 0x273   : > { %v2416_v59 = vsel %vm2333_vm8, %v2415_v20, %v2414_v39  ;;  %v2580_v45 = vmul.f32 %v4984_v49, %v2546_v22  ;;  %v2547_v48 = vunpack.c.h.bf16 %v2544_v17  ;;  %v2540_v41 = vmul.f32 0.1, %v2330_v43 }
 0x274   : > { %v2499_v36 = vsub.s32 %v2495_v21, %v2498_v33  ;;  %v2419_v34 = vsel %vm4994_vm10, %v4725_v29, %v2416_v59  ;;  %v2417_v55 = vsub.s32 4, %v4887_v10  ;;  %v5005_v40 = vrot.slane %v4951_v47, %v2561_v15 }
 0x275   : > { %v5007_v53 = vrot.slane %v2553_v35, %v2561_v15  ;;  %3469 = vcosq.f32 %v2419_v34  ;;  %v5013_v42 = vadd.f32 %v2580_v45, %v2565_v38  ;;  %v2595_v31 = vstv %s4988_s13  ;;  %s2940_s13 = sshll.u32 %s2726_s28, 4 }
 0x276   : > { %v2501_v26 = vsub.s32 0, %v2499_v36  ;;  %3471 = vsinq.f32 %v2419_v34  ;;  %v2418_v44 = vsel %vm2333_vm8, %v2417_v55, %v4887_v10  ;;  %v2566_v47 = vmul.f32 %v5005_v40, %v2540_v41 }
 0x277   : > { %v2581_v18 = vmul.f32 %v5007_v53, %v2547_v48  ;;  %v2596_v51 = vmul.f32 %v2595_v31, %v5013_v42  ;;  %v2420_v58 = vsel %vm4994_vm10, 0, %v2418_v44  ;;  %v2491_v54 = vadd.s32 %v4956_v25, %v4961_v7 }
 0x278   : > { %v2926_v8 = vmin.u32 %v2501_v26, %v2499_v36  ;;  %vm2115_vm12 = vcmask 7168   ;;  %v2589_v50 = vstv %s5009_s12  ;;  %v2607_v3 = vstv %s5011_s16  ;;  %s2730_s12 = sshll.u32 %s3779_s18, 4  ;;  %s5098_s12 = int_to_ptr.vmem [resolvable:$true] %s2730_s12 }
 0x279   : > { %v5028_v10 = vadd.f32 %v2581_v18, %v2566_v47  ;;  %v2424_v5 = vadd.s32 3, %v2420_v58  ;;  %v2600_v32 = vrot.slane %v2596_v51, 1  ;;  %v2590_v7 = vmul.f32 %v2589_v50, %v5013_v42  ;;  %v2545_v51 = vld [vmem:[%s3759_s11 + $0x8] sm:$0x11]  ;;  %s2684_s11 = sld [smem:[#allocation4]]  ;;  %s3496_s6 = scalar_lea.vmem %s5098_s12, 32 }
 0x27a   : > { %v2503_v27 = vclz %v2926_v8  ;;  %v2608_v21 = vmul.f32 %v2607_v3, %v5013_v42  ;;  %v2619_v4 = vstv %s5021_s17  ;;  %vm2117_vm13 = vcmask 0   ;;  %p3497_p13 = scmp.ne.s32.totalorder %s5098_s12, %s3496_s6 }
 0x27b   : > { %v2597_v19 = vmul.f32 %v2595_v31, %v5028_v10  ;;  %v2425_v17 = vand.u32 3, %v2424_v5  ;;  %v2604_v35 = vadd.f32 %v2600_v32, %v2590_v7  ;;  %v2521_v33 = vsub.s32 4, %v4977_v62 }
 0x27c   : > { %v2927_v28 = vadd.s32 4294967294, %v2503_v27  ;;  %v2612_v9 = vrot.slane %v2608_v21, 2  ;;  %v2620_v59 = vmul.f32 %v2619_v4, %v5013_v42  ;;  %vm2437_vm14 = vcmp.lt.s32.totalorder %v4805_v56, 0  ;;  %p3498_p1 = pnand %p3497_p13, %p5572_p0 }
 0x27d   : > { %v2601_v11 = vrot.slane %v2597_v19, 1  ;;  %v2609_v15 = vmul.f32 %v2607_v3, %v5028_v10  ;;  %v2631_v43 = vstv %s5032_s7  ;;  %vm2427_vm15 = vcmp.eq.s32.totalorder %v2425_v17, 0  ;;  %s5096_s7 = scalar_lea.hbm %s5156_s5, %s2940_s13 }
 0x27e   : > { %vm2928_vm11 = vcmp.lt.s32.totalorder %v2927_v28, 0  ;;  %vm2430_vm0 = vcmp.eq.s32.totalorder %v2425_v17, 2  ;;  %v2591_v14 = vmul.f32 %v2589_v50, %v5028_v10  ;;  %v2616_v26 = vadd.f32 %v2612_v9, %v2604_v35  ;;  %p3499_p2 = pneg %p3498_p1 }
 0x27f   : > { %v2506_v1 = vsel %vm2928_vm11, 0, %v2927_v28  ;;  %v3470_v2 = vpop.eup %3469  ;;  %vm5050_vm1 = vcmp.le.f32.partialorder %v2435_v61, 0.7853982  ;;  %v2522_v48 = vsel %vm2437_vm14, %v2521_v33, %v4977_v62  ;;  %v2624_v55 = vrot.slane %v2620_v59, 3 }
 0x280   : > { %v2507_v6 = vsub.s32 32, %v2506_v1  ;;  %v2511_v16 = vsub.s32 4294967266, %v2506_v1  ;;  %v2508_v37 = vshll.u32 %v2499_v36, %v2506_v1  ;;  %v3472_v25 = vpop.eup %3471  ;;  %v2431_v63 = vxor.u32 2147483648, %v3470_v2 }
 0x281   : > { %v2428_v13 = vxor.u32 2147483648, %v3472_v25  ;;  %v2605_v41 = vadd.f32 %v2601_v11, %v2591_v14  ;;  %v2632_v27 = vmul.f32 %v2631_v43, %v5013_v42  ;;  %vm2426_vm2 = vcmp.lt.s32.totalorder %v2425_v17, 2 }
 0x282   : > { %v2509_v0 = vshrl.u32 %v2491_v54, %v2507_v6  ;;  %v2512_v46 = vadd.s32 127, %v2511_v16  ;;  %v2432_v38 = vsel %vm2430_vm0, %v2431_v63, %v3472_v25  ;;  %v2613_v31 = vrot.slane %v2609_v15, 2 }
 0x283   : > { %v2429_v34 = vsel %vm2427_vm15, %v3470_v2, %v2428_v13  ;;  %v2643_v61 = vstv %s5038_s14  ;;  %v2621_v62 = vmul.f32 %v2619_v4, %v5028_v10  ;;  %v2628_v18 = vadd.f32 %v2624_v55, %v2616_v26  ;;  %s3608_s14 = smov [#allocation10]  }
 0x284   : > { %v2510_v57 = vor.u32 %v2509_v0, %v2508_v37  ;;  %v2513_v52 = vshll.u32 %v2512_v46, 23  ;;  %v2433_v44 = vsel %vm2426_vm2, %v2429_v34, %v2432_v38  ;;  %vm2423_vm3 = vweird.f32 %v4725_v29 }
 0x285   : > { %v2524_v1 = vsel %vm5050_vm1, 0, %v2522_v48  ;;  %v2617_v58 = vadd.f32 %v2613_v31, %v2605_v41  ;;  %v2636_v54 = vrot.slane %v2632_v27, 4  ;;  %v2644_v6 = vmul.f32 %v2643_v61, %v5013_v42 }
 0x286   : > { %v2514_v39 = vor.u32 4788187, %v2513_v52  ;;  %v2517_v20 = vcvt.s32.f32 %v2510_v57  ;;  %v2434_v16 = vsel %vm2423_vm3, nan, %v2433_v44  ;;  %v2655_v50 = vstv %s5045_s19  ;;  %s3500_s19 = sshll.u32 %s3608_s14, 4  ;;  %s3501_s19 = int_to_ptr.vmem [resolvable:$false] %s3500_s19 }
 0x287   : > { %v2625_v37 = vrot.slane %v2621_v62, 3  ;;  %v2633_v0 = vmul.f32 %v2631_v43, %v5028_v10  ;;  %v2640_v46 = vadd.f32 %v2636_v54, %v2628_v18  ;;  %v2528_v3 = vadd.s32 3, %v2524_v1  ;;  %p3503_p4 = scmp.lt.s32.totalorder %s5098_s12, %s3501_s19 }
 0x288   : > { %v2515_v23 = vand.u32 2147483647, %v2514_v39  ;;  %v2548_v5 = vunpack.c.l.bf16 %v2545_v51  ;;  %v2541_v29 = vmul.f32 0.1, %v2434_v16  ;;  %v2648_v32 = vrot.slane %v2644_v6, 5 }
 0x289   : > { %v2110_v30 = vpop.permute.xlu1 %2109  ;;  %v2656_v2 = vmul.f32 %v2655_v50, %v5013_v42  ;;  %v2667_v57 = vstv %s5061_s3  ;;  %v2637_v52 = vrot.slane %v2633_v0, 4  ;;  %v2645_v25 = vmul.f32 %v2643_v61, %v5028_v10  ;;  %s3502_s3 = scalar_lea.vmem %s3501_s19, 64 }
 0x28a   : > { %2116 = vst.msk [vmem:[#allocation3] sm:$0xff] %vm2115_vm12, %v2110_v30  ;;  %v2518_v36 = vmul.f32 %v2517_v20, %v2515_v23  ;;  %v2629_v30 = vadd.f32 %v2625_v37, %v2617_v58  ;;  %v2652_v7 = vadd.f32 %v2648_v32, %v2640_v46  ;;  %v2529_v19 = vand.u32 3, %v2528_v3  ;;  %p3504_p5 = scmp.lt.s32.totalorder %s3502_s3, %s3496_s6 }
 0x28b   : > { %v2582_v21 = vmul.f32 %v4984_v49, %v2548_v5  ;;  %v2567_v39 = vmul.f32 %v4982_v12, %v2541_v29  ;;  %v2660_v17 = vrot.slane %v2656_v2, 6  ;;  %v2668_v35 = vmul.f32 %v2667_v57, %v5013_v42 }
 0x28c   : > { %v2519_v8 = vxor.u32 2147483648, %v2518_v36  ;;  %v2641_v4 = vadd.f32 %v2637_v52, %v2629_v30  ;;  %v2649_v20 = vrot.slane %v2645_v25, 5  ;;  %v2657_v33 = vmul.f32 %v2655_v50, %v5028_v10  ;;  %p3505_p6 = por %p3504_p5, %p3503_p4 }
 0x28d   : > { %v2112_v22 = vpop.permute.xlu1 %2111  ;;  %vm2531_vm4 = vcmp.eq.s32.totalorder %v2529_v19, 0  ;;  %vm2534_vm5 = vcmp.eq.s32.totalorder %v2529_v19, 2  ;;  %v2549_v9 = vunpack.c.h.bf16 %v2545_v51  ;;  %v2586_v59 = vadd.f32 %v2582_v21, %v2567_v39 }
 0x28e   : > { %2118 = vst.msk [vmem:[#allocation3 + $0x8] sm:$0x1] %vm2117_vm13, %v2112_v22  ;;  %v2520_v28 = vsel %vm2437_vm14, %v2519_v8, %v2518_v36  ;;  %v2664_v22 = vadd.f32 %v2660_v17, %v2652_v7  ;;  %v2653_v12 = vadd.f32 %v2649_v20, %v2641_v4  ;;  %v2672_v36 = vrot.slane %v2668_v35, 7  ;;  %p3506_p7 = pnand %p3505_p6, %p3499_p2 }
 0x28f   : > { %v2523_v47 = vsel %vm5050_vm1, %v4805_v56, %v2520_v28  ;;  %vm2527_vm6 = vweird.f32 %v4805_v56  ;;  %vm2530_vm7 = vcmp.lt.s32.totalorder %v2529_v19, 2  ;;  %v2679_v15 = vstv %s5076_s23 }
 0x290   : > { %3473 = vcosq.f32 %v2523_v47  ;;  %v2661_v14 = vrot.slane %v2657_v33, 6  ;;  %v2669_v26 = vmul.f32 %v2667_v57, %v5028_v10  ;;  %v2676_v34 = vadd.f32 %v2672_v36, %v2664_v22 }
 0x291   : > { %3475 = vsinq.f32 %v2523_v47  ;;  %v2583_v8 = vmul.f32 %v5007_v53, %v2549_v9  ;;  %v2680_v41 = vmul.f32 %v2679_v15, %v2586_v59  ;;  %v2685_v56 = vstv %s2684_s11 }
 0x292   : > { %v2665_v48 = vadd.f32 %v2661_v14, %v2653_v12  ;;  %v2673_v27 = vrot.slane %v2669_v26, 7  ;;  %v3607_v18 = vmov 1966171168   ;;  %vm2710_vm8 = vcmp.lt.s32.totalorder %v2555_v24, 256 }
 0x293   : > { %v2682_v28 = vadd.f32 %v2680_v41, %v2676_v34  ;;  %v2694_v53 = vunpack.c.l.s4 %v3607_v18 }
 0x294   : > { %v2677_v61 = vadd.f32 %v2673_v27, %v2665_v48 }
 0x295   : > { %v2686_v47 = vadd.f32 %v2685_v56, %v2682_v28  ;;  %v2695_v1 = vunpack.c.0.s8 %v2694_v53 }
 0x297   : > { %3477 = vtanh.f32 %v2686_v47  ;;  %v2698_v51 = vsub.s32 %v2695_v1, %v4973_v60 }
 0x29a   : > { %v3474_v13 = vpop.eup %3473 }
 0x29b   : > { %v3476_v63 = vpop.eup %3475  ;;  %v2535_v23 = vxor.u32 2147483648, %v3474_v13 }
 0x29c   : > { %v2532_v11 = vxor.u32 2147483648, %v3476_v63 }
 0x29d   : > { %v2536_v49 = vsel %vm2534_vm5, %v2535_v23, %v3476_v63 }
 0x29e   : > { %v2533_v42 = vsel %vm2531_vm4, %v3474_v13, %v2532_v11 }
 0x29f   : > { %v2537_v43 = vsel %vm2530_vm7, %v2533_v42, %v2536_v49 }
 0x2a0   : > { %v2538_v38 = vsel %vm2527_vm6, nan, %v2537_v43 }
 0x2a1   : > { %v2542_v45 = vmul.f32 0.1, %v2538_v38 }
 0x2a3   : > { %v2568_v55 = vmul.f32 %v5005_v40, %v2542_v45  ;;  %v3478_v40 = vpop.eup %3477 }
 0x2a5   : > { %v2587_v31 = vadd.f32 %v2583_v8, %v2568_v55 }
 0x2a7   : > { %v2681_v44 = vmul.f32 %v2679_v15, %v2587_v31 }
 0x2a9   : > { %v2683_v10 = vadd.f32 %v2681_v44, %v2677_v61 }
 0x2ab   : > { %v2687_v62 = vadd.f32 %v2685_v56, %v2683_v10 }
 0x2ad   : > { %3479 = vtanh.f32 %v2687_v62 }
 0x2b7   : > { %v3480_v58 = vpop.eup %3479 }
 0x2b8   : > { %v2692_v54 = vcombine.low %v3478_v40, %v3480_v58 }
 0x2ba   : > { %v2699_v6 = vrot.slane %v2692_v54, %v2698_v51 }
 0x2bc   : > { %v2706_v16 = vrot.slane %v2699_v6, %v2698_v51 }
 0x2be   : > { %2712 = vst.msk [vmem:[%s3779_s18] sm:$0x3] %vm2710_vm8, %v2706_v16 }
 0x2bf   : > { %3509 = shalt.err (!%p3506_p7)
}
 0x2c0   : > { %s3510_s8 = scalar_lea.hbm %s5096_s7, 32  ;;  %s3514_s11 = scalar_lea.hbm %s5156_s5, 128 }
 0x2c1   : > { %p3511_p10 = scmp.ne.s32.totalorder %s5096_s7, %s3510_s8  ;;  %p3515_p3 = scmp.lt.u32.totalorder %s5096_s7, %s5156_s5 }
 0x2c2   : > { %p3516_p8 = scmp.lt.u32.totalorder %s3514_s11, %s3510_s8  ;;  %p3518_p13 = scmp.lt.u32.totalorder %s3510_s8, %s5096_s7 }
 0x2c3   : > { %p3512_p11 = pnand %p3511_p10, %p5572_p0 }
 0x2c4   : > { %p3517_p9 = por %p3516_p8, %p3515_p3 }
 0x2c5   : > { %p3513_p12 = pneg %p3512_p11 }
 0x2c6   : > { %p3519_p1 = por %p3518_p13, %p3517_p9 }
 0x2c8   : > { %p3520_p2 = pnand %p3519_p1, %p3513_p12 }
 0x2ca   : > { %3523 = shalt.err (!%p3520_p2)
}
 0x2cb   : > { %3371 = dma.vmem_to_hbm [thread:$0]  (%p5572_p0), %s5098_s12, 32, %s5096_s7, %s2714_s24  }
 0x2cc PF: > { %p3383_p4 = scmp.ge.s32.totalorder %s3594_s27, 2  ;;  %s2742_s13 = sand.u32 1, %s3566_s20  }
 0x2cd   : > { %p5573_p5 = scmp.ne.s32.totalorder %s5301_s10, 0  ;;  %s2743_s16 = scalar_lea.sflag [#allocation8], %s2742_s13 }
 0x2cf   : > { %p3378_p6 = pnand %p3383_p4, %p5573_p5 }
 0x2d1   : > { %3561 = dma.done.wait (!%p3378_p6), %s2743_s16, 32  }
 0x2d2   : > { %3563 = vsyncadd (!%p3378_p6), %s2743_s16, 4294967264  ;;  %s20_s27 = sadd.s32 1, %s3594_s27   ;;  %s5574_s20 = smov %s3570_s21 }
 0x2d3   : > { %p17_p7 = scmp.ge.s32.totalorder %s20_s27, 6   ;;  %s5575_s21 = smov %s3574_s22 }
 0x2d4   : > { %s5576_s22 = smov %s3724_s15  ;;  %s5577_s23 = smov %s3586_s25 }
 0x2d5   : > { %s5578_s24 = smov %s3590_s26  ;;  %s5579_s25 = smov %s5582_s29 }
 0x2d6   : > { %s5580_s26 = smov %s5586_s30  ;;  %19 = sbr.rel (!%p17_p7) target bundleno = 9 (0x9), region = 161 }
 0x2dd   :  { %2748 = vsyncpa [#allocation8], 1 }
 0x2de   :  { %2750 = vsyncpa [#allocation8 + $0x1], 1 }
 0x2df   :  { %2751 = vsyncpa [#allocation9], 1 }
 0x2e0   :  { %2753 = vsyncpa [#allocation9 + $0x1], 1 }

</bundles_post_ra>
